<compile_context>
chip_gen: v7x
topology: tpu7x:2x2x1
jax: 0.10.0
libtpu: 0.0.40
codegen_flags: <defaults>
</compile_context>

<pallas_src>
import math

import jax
import jax.numpy as jnp
import numpy as np
from jax.experimental import pallas as pl
from jax.experimental.pallas import tpu as pltpu

_LANE = 128  # pad every *output* feature width to a multiple of 128 lanes


def _cdiv(a, b):
    return -(-a // b)


def _round_up(n, m):
    return _cdiv(n, m) * m


# ----------------------------- Pallas kernel ------------------------------ #
def _encoder_kernel(x_ref, w1, w2, w3, w4, b_ref, o_ref):
    """Fused 4-layer MLP: relu(fc1) -> relu(fc2) -> relu(fc3) -> fc4.

    bf16 operands on the MXU, f32 accumulation; bias add / ReLU in f32.
    b_ref holds all four bias rows packed as (4, max_out_pad).
    """

    def lin(h_bf16, w_ref, layer):
        out_pad = w_ref.shape[1]
        acc = jnp.dot(h_bf16, w_ref[...], preferred_element_type=jnp.float32)
        return acc + b_ref[layer:layer + 1, :out_pad]

    h = lin(x_ref[...], w1, 0)                      # x already bf16 (host cast)
    h = jnp.maximum(h, 0.0).astype(jnp.bfloat16)
    h = jnp.maximum(lin(h, w2, 1), 0.0).astype(jnp.bfloat16)
    h = jnp.maximum(lin(h, w3, 2), 0.0).astype(jnp.bfloat16)
    h = lin(h, w4, 3)                               # no ReLU after fc4
    o_ref[...] = h.astype(o_ref.dtype)


# ------------------------------- wrapper ----------------------------------- #
def _vmem_capacity_bytes():
    try:
        return int(pltpu.get_tpu_info().vmem_capacity_bytes)
    except Exception:
        return 64 << 20  # conservative: v7x per-TensorCore VMEM


def _choose_bm(B, requested=None):
    """Batch-tile policy: large tiles, grid an even multiple for v7x megacore."""
    if requested is not None:
        bm = requested
    elif B <= 1024:
        # Two grid steps -> both v7x TensorCores busy; one big tile per core.
        bm = max(8, _round_up(_cdiv(B, 2), 8))
    else:
        bm = 512  # measured: 512-row tiles reach ~85% of HBM roofline
    bm = max(8, min(bm, 512, _round_up(B, 8)))
    if requested is None:
        steps = _cdiv(B, bm)
        if steps > 1 and steps % 2 == 1:            # keep grid even for v7x
            bm = max(8, _round_up(_cdiv(B, steps + 1), 8))
    return bm


def supermask_svs1_encoder_forward(x, params, out_dim, *, bm=None):
    """x: (B, x_dim) f32.  params: 4 tuples (W (in_pad, out_pad) bf16,
    b (1, out_pad) f32); layer-1 W has in_pad == x_dim (x is fed un-padded),
    deeper layers have in_pad == previous out_pad.  Returns (B, out_dim) f32."""
    B, x_dim = x.shape
    assert params[0][0].shape[0] == x_dim
    out_pad = int(params[-1][0].shape[1])

    bm = _choose_bm(B, bm)
    grid = (_cdiv(B, bm),)

    # Half the x HBM->VMEM DMA bytes; the MXU consumes bf16 anyway.
    x_bf = x.astype(jnp.bfloat16)

    # Pack the four bias rows into a single lane-dense array -> one DMA.
    max_op = max(int(w.shape[1]) for w, _ in params)
    b_all = jnp.zeros((len(params), max_op), jnp.float32)
    for l, (_, b) in enumerate(params):
        b_all = b_all.at[l, : b.shape[1]].set(b[0])

    weights = [w for w, _ in params]
    w_bytes = sum(int(w.size) * w.dtype.itemsize for w in weights)
    b_bytes = int(b_all.size) * 4

    # Scheduler hints.
    flops = 2 * B * sum(int(w.shape[0]) * int(w.shape[1]) for w in weights)
    bytes_accessed = int(x_bf.size) * 2 + B * out_pad * 4 + w_bytes + b_bytes
    cost = pl.CostEstimate(flops=flops, transcendentals=0,
                           bytes_accessed=bytes_accessed)

    def run(single_buffer_weights):
        if single_buffer_weights:
            # Grid-invariant blocks: fetched once, held in a single buffer.
            def const_spec(shape):
                return pl.BlockSpec(shape, lambda i: (0, 0),
                                    pipeline_mode=pl.Buffered(1))
            w_mult = 1
        else:
            def const_spec(shape):
                return pl.BlockSpec(shape, lambda i: (0, 0))
            w_mult = 2

        in_specs = [pl.BlockSpec((bm, x_dim), lambda i: (i, 0))]
        in_specs += [const_spec(tuple(w.shape)) for w in weights]
        in_specs.append(const_spec(tuple(b_all.shape)))
        out_spec = pl.BlockSpec((bm, out_pad), lambda i: (i, 0))

        # VMEM budget: double-buffered x/out tiles + resident params, with
        # headroom, derived from the actual chip's VMEM capacity.
        vmem_needed = (2 * bm * x_dim * 2            # bf16 x, double-buffered
                       + 2 * bm * out_pad * 4        # f32 out, double-buffered
                       + w_mult * (w_bytes + b_bytes))
        vmem_cap = _vmem_capacity_bytes()
        vmem_limit = int(min(max(2 * vmem_needed, 16 << 20),
                             int(0.9 * vmem_cap)))

        return pl.pallas_call(
            _encoder_kernel,
            out_shape=jax.ShapeDtypeStruct((B, out_pad), jnp.float32),
            grid=grid,
            in_specs=in_specs,
            out_specs=out_spec,
            compiler_params=pltpu.CompilerParams(
                dimension_semantics=("parallel",),
                vmem_limit_bytes=vmem_limit),
            cost_estimate=cost,
        )(x_bf, *weights, b_all)

    try:
        out = run(True)
    except Exception:
        # pipeline_mode=pl.Buffered(1) unsupported on this build; fall back to
        # default double-buffered constant blocks (correctness unchanged).
        out = run(False)

    return out[:, :out_dim]


# ------------------------- parameter construction ------------------------- #
def _svs1_mask(scores_abs, var_sparsity):
    """Binary mask: zero the j = int(sigmoid(var_sparsity)*numel) smallest |scores|."""
    flat = np.asarray(scores_abs).ravel()
    numel = flat.size
    prune_frac = 1.0 / (1.0 + math.exp(-float(var_sparsity)))   # sigmoid(vs)
    j = int(prune_frac * numel)
    order = np.argsort(flat, kind="stable")
    ranks = np.empty_like(order)
    ranks[order] = np.arange(numel)
    mask = (ranks >= j).astype(np.float32)
    return mask.reshape(np.asarray(scores_abs).shape)


def _pack_layer(w_out_in, b_out, in_dim, out_dim, in_pad):
    """Transpose to (in,out), zero-pad to (in_pad, out_pad), weight -> bf16."""
    out_pad = _round_up(out_dim, _LANE)
    w_pad = np.zeros((in_pad, out_pad), np.float32)
    w_pad[:in_dim, :out_dim] = np.asarray(w_out_in).T
    b_pad = np.zeros((1, out_pad), np.float32)
    b_pad[0, :out_dim] = np.asarray(b_out)
    return (jnp.asarray(w_pad, jnp.bfloat16), jnp.asarray(b_pad, jnp.float32))


def make_svs1_linear_params(key, in_dim, out_dim, in_pad):
    """One Supermask_SVS1_Linear layer: masked weight + bias, padded/packed."""
    k_w, k_s, k_b, k_v = jax.random.split(key, 4)
    # kaiming_normal_(weight, mode='fan_in', nonlinearity='relu')
    std = math.sqrt(2.0 / in_dim)
    w = std * jax.random.normal(k_w, (out_dim, in_dim), jnp.float32)
    # kaiming_uniform_(scores, a=sqrt(5)) -> bound = sqrt(1/fan_in)
    s_bound = math.sqrt(1.0 / in_dim)
    scores = jax.random.uniform(k_s, (out_dim, in_dim), jnp.float32,
                                -s_bound, s_bound)
    # nn.Linear default bias init
    b_bound = 1.0 / math.sqrt(in_dim)
    b = jax.random.uniform(k_b, (out_dim,), jnp.float32, -b_bound, b_bound)
    var_sparsity = float(jax.random.normal(k_v, ()))

    mask = _svs1_mask(np.abs(np.asarray(scores)), var_sparsity)
    w_masked = np.asarray(w) * mask
    return _pack_layer(w_masked, b, in_dim, out_dim, in_pad)


def make_plain_linear_params(key, in_dim, out_dim, in_pad):
    """Plain nn.Linear (not pruned) with default PyTorch init, padded/packed."""
    k_w, k_b = jax.random.split(key, 2)
    bound = 1.0 / math.sqrt(in_dim)   # kaiming_uniform(a=sqrt(5)) -> 1/sqrt(fan_in)
    w = jax.random.uniform(k_w, (out_dim, in_dim), jnp.float32, -bound, bound)
    b = jax.random.uniform(k_b, (out_dim,), jnp.float32, -bound, bound)
    return _pack_layer(np.asarray(w), b, in_dim, out_dim, in_pad)


def build_encoder_params(key, x_dim, h1, h2, h3, h4, weights_to_prune="1234"):
    dims = [(x_dim, h1), (h1, h2), (h2, h3), (h3, h4)]
    keys = jax.random.split(key, len(dims))
    params = []
    in_pad = x_dim              # layer 1: K = x_dim exactly, x fed un-padded
    for layer_idx, (k, (i, o)) in enumerate(zip(keys, dims), start=1):
        if str(layer_idx) in weights_to_prune:
            params.append(make_svs1_linear_params(k, i, o, in_pad))
        else:
            params.append(make_plain_linear_params(k, i, o, in_pad))
        in_pad = _round_up(o, _LANE)   # next layer consumes padded activations
    return params


# ------------------------------- reference -------------------------------- #
def reference_forward(x, params, out_dim):
    """Pure-JAX reference with the same bf16-operand / f32-accumulate numerics."""
    h = x.astype(jnp.bfloat16)
    n = len(params)
    for l, (w, b) in enumerate(params):
        z = jnp.dot(h, w, preferred_element_type=jnp.float32) + b
        if l < n - 1:
            h = jnp.maximum(z, 0.0).astype(jnp.bfloat16)
        else:
            h = z
    return h[:, :out_dim]


# --------------------------------- main ------------------------------------ #
if __name__ == "__main__":
    # Small layer widths consistent with the module; batch gives two 128-row
    # parallel grid steps so both v7x TensorCores are used.
    B, x_dim, h1, h2, h3, h4 = 256, 64, 64, 32, 32, 16

    key = jax.random.PRNGKey(0)
    k_x, k_p = jax.random.split(key)
    x = jax.random.normal(k_x, (B, x_dim), jnp.float32)
    params = build_encoder_params(k_p, x_dim, h1, h2, h3, h4,
                                  weights_to_prune="1234")

    out = supermask_svs1_encoder_forward(x, params, out_dim=h4)
    out = jax.block_until_ready(out)

    ref = reference_forward(x, params, out_dim=h4)
    assert out.shape == (B, h4)
    max_err = float(jnp.max(jnp.abs(out - ref)))
    assert jnp.allclose(out, ref, atol=1e-2, rtol=1e-2), f"max abs err {max_err}"

    print("KERNEL_OK")
</pallas_src>

<mosaic_0001>
module attributes {stable_mosaic.version = 11 : i64} {
  func.func @_encoder_kernel(%arg0: i32, %arg1: memref<128x64xbf16, #tpu.memory_space<vmem>>, %arg2: memref<64x128xbf16, #tpu.memory_space<vmem>>, %arg3: memref<128x128xbf16, #tpu.memory_space<vmem>>, %arg4: memref<128x128xbf16, #tpu.memory_space<vmem>>, %arg5: memref<128x128xbf16, #tpu.memory_space<vmem>>, %arg6: memref<4x128xf32, #tpu.memory_space<vmem>>, %arg7: memref<128x128xf32, #tpu.memory_space<vmem>>) attributes {dimension_semantics = [#tpu.dimension_semantics<parallel>], iteration_bounds = array<i64: 2>, scalar_prefetch = 0 : i64, scratch_operands = 0 : i64, tpu.core_type = #tpu.core_type<tc>, window_params = [{transform_indices = @transform_0, window_bounds = array<i64: 128, 64>}, {pipeline_mode = #tpu.pipeline_mode<synchronous>, transform_indices = @transform_1, window_bounds = array<i64: 64, 128>}, {pipeline_mode = #tpu.pipeline_mode<synchronous>, transform_indices = @transform_2, window_bounds = array<i64: 128, 128>}, {pipeline_mode = #tpu.pipeline_mode<synchronous>, transform_indices = @transform_3, window_bounds = array<i64: 128, 128>}, {pipeline_mode = #tpu.pipeline_mode<synchronous>, transform_indices = @transform_4, window_bounds = array<i64: 128, 128>}, {pipeline_mode = #tpu.pipeline_mode<synchronous>, transform_indices = @transform_5, window_bounds = array<i64: 4, 128>}, {transform_indices = @transform_6, window_bounds = array<i64: 128, 128>}]} {
    %c0 = arith.constant 0 : index
    %c0_0 = arith.constant 0 : index
    %0 = vector.load %arg1[%c0, %c0_0] : memref<128x64xbf16, #tpu.memory_space<vmem>>, vector<128x64xbf16>
    %c0_1 = arith.constant 0 : index
    %c0_2 = arith.constant 0 : index
    %1 = vector.load %arg2[%c0_1, %c0_2] : memref<64x128xbf16, #tpu.memory_space<vmem>>, vector<64x128xbf16>
    %cst = arith.constant dense<0.000000e+00> : vector<128x128xf32>
    %2 = tpu.matmul %0, %1, %cst {dimension_numbers = #tpu.dot_dimension_numbers<[1], [0], [0], [1], [0, 0, 1, 1], [], []>} : vector<128x64xbf16>, vector<64x128xbf16>, vector<128x128xf32> -> vector<128x128xf32>
    %c0_3 = arith.constant 0 : index
    %c0_4 = arith.constant 0 : index
    %3 = vector.load %arg6[%c0_3, %c0_4] : memref<4x128xf32, #tpu.memory_space<vmem>>, vector<1x128xf32>
    %4 = vector.broadcast %3 : vector<1x128xf32> to vector<128x128xf32>
    %5 = arith.addf %2, %4 : vector<128x128xf32>
    %cst_5 = arith.constant 0.000000e+00 : f32
    %6 = vector.broadcast %cst_5 : f32 to vector<128x128xf32>
    %7 = arith.maximumf %5, %6 : vector<128x128xf32>
    %8 = arith.truncf %7 : vector<128x128xf32> to vector<128x128xbf16>
    %c0_6 = arith.constant 0 : index
    %c0_7 = arith.constant 0 : index
    %9 = vector.load %arg3[%c0_6, %c0_7] : memref<128x128xbf16, #tpu.memory_space<vmem>>, vector<128x128xbf16>
    %cst_8 = arith.constant dense<0.000000e+00> : vector<128x128xf32>
    %10 = tpu.matmul %8, %9, %cst_8 {dimension_numbers = #tpu.dot_dimension_numbers<[1], [0], [0], [1], [0, 0, 1, 1], [], []>} : vector<128x128xbf16>, vector<128x128xbf16>, vector<128x128xf32> -> vector<128x128xf32>
    %c1 = arith.constant 1 : index
    %c0_9 = arith.constant 0 : index
    %11 = vector.load %arg6[%c1, %c0_9] : memref<4x128xf32, #tpu.memory_space<vmem>>, vector<1x128xf32>
    %12 = vector.broadcast %11 : vector<1x128xf32> to vector<128x128xf32>
    %13 = arith.addf %10, %12 : vector<128x128xf32>
    %cst_10 = arith.constant 0.000000e+00 : f32
    %14 = vector.broadcast %cst_10 : f32 to vector<128x128xf32>
    %15 = arith.maximumf %13, %14 : vector<128x128xf32>
    %16 = arith.truncf %15 : vector<128x128xf32> to vector<128x128xbf16>
    %c0_11 = arith.constant 0 : index
    %c0_12 = arith.constant 0 : index
    %17 = vector.load %arg4[%c0_11, %c0_12] : memref<128x128xbf16, #tpu.memory_space<vmem>>, vector<128x128xbf16>
    %cst_13 = arith.constant dense<0.000000e+00> : vector<128x128xf32>
    %18 = tpu.matmul %16, %17, %cst_13 {dimension_numbers = #tpu.dot_dimension_numbers<[1], [0], [0], [1], [0, 0, 1, 1], [], []>} : vector<128x128xbf16>, vector<128x128xbf16>, vector<128x128xf32> -> vector<128x128xf32>
    %c2 = arith.constant 2 : index
    %c0_14 = arith.constant 0 : index
    %19 = vector.load %arg6[%c2, %c0_14] : memref<4x128xf32, #tpu.memory_space<vmem>>, vector<1x128xf32>
    %20 = vector.broadcast %19 : vector<1x128xf32> to vector<128x128xf32>
    %21 = arith.addf %18, %20 : vector<128x128xf32>
    %cst_15 = arith.constant 0.000000e+00 : f32
    %22 = vector.broadcast %cst_15 : f32 to vector<128x128xf32>
    %23 = arith.maximumf %21, %22 : vector<128x128xf32>
    %24 = arith.truncf %23 : vector<128x128xf32> to vector<128x128xbf16>
    %c0_16 = arith.constant 0 : index
    %c0_17 = arith.constant 0 : index
    %25 = vector.load %arg5[%c0_16, %c0_17] : memref<128x128xbf16, #tpu.memory_space<vmem>>, vector<128x128xbf16>
    %cst_18 = arith.constant dense<0.000000e+00> : vector<128x128xf32>
    %26 = tpu.matmul %24, %25, %cst_18 {dimension_numbers = #tpu.dot_dimension_numbers<[1], [0], [0], [1], [0, 0, 1, 1], [], []>} : vector<128x128xbf16>, vector<128x128xbf16>, vector<128x128xf32> -> vector<128x128xf32>
    %c3 = arith.constant 3 : index
    %c0_19 = arith.constant 0 : index
    %27 = vector.load %arg6[%c3, %c0_19] : memref<4x128xf32, #tpu.memory_space<vmem>>, vector<1x128xf32>
    %28 = vector.broadcast %27 : vector<1x128xf32> to vector<128x128xf32>
    %29 = arith.addf %26, %28 : vector<128x128xf32>
    %c0_20 = arith.constant 0 : index
    %c0_21 = arith.constant 0 : index
    %30 = vector.load %arg7[%c0_20, %c0_21] : memref<128x128xf32, #tpu.memory_space<vmem>>, vector<128x128xf32>
    tpu.vector_store %arg7[%c0_20, %c0_21], %29 {strides = array<i32>} : memref<128x128xf32, #tpu.memory_space<vmem>>, vector<128x128xf32>,
    return
  }
  func.func @transform_0(%arg0: i32) -> (i32, i32) {
    %c0_i32 = arith.constant 0 : i32
    %c0_i32_0 = arith.constant 0 : i32
    return %arg0, %c0_i32 : i32, i32
  }
  func.func @transform_1(%arg0: i32) -> (i32, i32) {
    %c0_i32 = arith.constant 0 : i32
    %c0_i32_0 = arith.constant 0 : i32
    %c0_i32_1 = arith.constant 0 : i32
    return %c0_i32, %c0_i32_0 : i32, i32
  }
  func.func @transform_2(%arg0: i32) -> (i32, i32) {
    %c0_i32 = arith.constant 0 : i32
    %c0_i32_0 = arith.constant 0 : i32
    %c0_i32_1 = arith.constant 0 : i32
    return %c0_i32, %c0_i32_0 : i32, i32
  }
  func.func @transform_3(%arg0: i32) -> (i32, i32) {
    %c0_i32 = arith.constant 0 : i32
    %c0_i32_0 = arith.constant 0 : i32
    %c0_i32_1 = arith.constant 0 : i32
    return %c0_i32, %c0_i32_0 : i32, i32
  }
  func.func @transform_4(%arg0: i32) -> (i32, i32) {
    %c0_i32 = arith.constant 0 : i32
    %c0_i32_0 = arith.constant 0 : i32
    %c0_i32_1 = arith.constant 0 : i32
    return %c0_i32, %c0_i32_0 : i32, i32
  }
  func.func @transform_5(%arg0: i32) -> (i32, i32) {
    %c0_i32 = arith.constant 0 : i32
    %c0_i32_0 = arith.constant 0 : i32
    %c0_i32_1 = arith.constant 0 : i32
    return %c0_i32, %c0_i32_0 : i32, i32
  }
  func.func @transform_6(%arg0: i32) -> (i32, i32) {
    %c0_i32 = arith.constant 0 : i32
    %c0_i32_0 = arith.constant 0 : i32
    return %arg0, %c0_i32 : i32, i32
  }
}

module attributes {stable_mosaic.version = 11 : i64} {
  func.func @_encoder_kernel(%arg0: i32, %arg1: memref<128x64xbf16, #tpu.memory_space<vmem>>, %arg2: memref<64x128xbf16, #tpu.memory_space<vmem>>, %arg3: memref<128x128xbf16, #tpu.memory_space<vmem>>, %arg4: memref<128x128xbf16, #tpu.memory_space<vmem>>, %arg5: memref<128x128xbf16, #tpu.memory_space<vmem>>, %arg6: memref<4x128xf32, #tpu.memory_space<vmem>>, %arg7: memref<128x128xf32, #tpu.memory_space<vmem>>) attributes {dimension_semantics = [#tpu.dimension_semantics<parallel>], iteration_bounds = array<i64: 2>, scalar_prefetch = 0 : i64, scratch_operands = 0 : i64, tpu.core_type = #tpu.core_type<tc>, window_params = [{transform_indices = @transform_0, window_bounds = array<i64: 128, 64>}, {pipeline_mode = #tpu.pipeline_mode<synchronous>, transform_indices = @transform_1, window_bounds = array<i64: 64, 128>}, {pipeline_mode = #tpu.pipeline_mode<synchronous>, transform_indices = @transform_2, window_bounds = array<i64: 128, 128>}, {pipeline_mode = #tpu.pipeline_mode<synchronous>, transform_indices = @transform_3, window_bounds = array<i64: 128, 128>}, {pipeline_mode = #tpu.pipeline_mode<synchronous>, transform_indices = @transform_4, window_bounds = array<i64: 128, 128>}, {pipeline_mode = #tpu.pipeline_mode<synchronous>, transform_indices = @transform_5, window_bounds = array<i64: 4, 128>}, {transform_indices = @transform_6, window_bounds = array<i64: 128, 128>}]} {
    %c0 = arith.constant 0 : index
    %c0_0 = arith.constant 0 : index
    %0 = vector.load %arg1[%c0, %c0_0] : memref<128x64xbf16, #tpu.memory_space<vmem>>, vector<128x64xbf16>
    %c0_1 = arith.constant 0 : index
    %c0_2 = arith.constant 0 : index
    %1 = vector.load %arg2[%c0_1, %c0_2] : memref<64x128xbf16, #tpu.memory_space<vmem>>, vector<64x128xbf16>
    %cst = arith.constant dense<0.000000e+00> : vector<128x128xf32>
    %2 = tpu.matmul %0, %1, %cst {dimension_numbers = #tpu.dot_dimension_numbers<[1], [0], [0], [1], [0, 0, 1, 1], [], []>} : vector<128x64xbf16>, vector<64x128xbf16>, vector<128x128xf32> -> vector<128x128xf32>
    %c0_3 = arith.constant 0 : index
    %c0_4 = arith.constant 0 : index
    %3 = vector.load %arg6[%c0_3, %c0_4] : memref<4x128xf32, #tpu.memory_space<vmem>>, vector<1x128xf32>
    %4 = vector.broadcast %3 : vector<1x128xf32> to vector<128x128xf32>
    %5 = arith.addf %2, %4 : vector<128x128xf32>
    %cst_5 = arith.constant 0.000000e+00 : f32
    %6 = vector.broadcast %cst_5 : f32 to vector<128x128xf32>
    %7 = arith.maximumf %5, %6 : vector<128x128xf32>
    %8 = arith.truncf %7 : vector<128x128xf32> to vector<128x128xbf16>
    %c0_6 = arith.constant 0 : index
    %c0_7 = arith.constant 0 : index
    %9 = vector.load %arg3[%c0_6, %c0_7] : memref<128x128xbf16, #tpu.memory_space<vmem>>, vector<128x128xbf16>
    %cst_8 = arith.constant dense<0.000000e+00> : vector<128x128xf32>
    %10 = tpu.matmul %8, %9, %cst_8 {dimension_numbers = #tpu.dot_dimension_numbers<[1], [0], [0], [1], [0, 0, 1, 1], [], []>} : vector<128x128xbf16>, vector<128x128xbf16>, vector<128x128xf32> -> vector<128x128xf32>
    %c1 = arith.constant 1 : index
    %c0_9 = arith.constant 0 : index
    %11 = vector.load %arg6[%c1, %c0_9] : memref<4x128xf32, #tpu.memory_space<vmem>>, vector<1x128xf32>
    %12 = vector.broadcast %11 : vector<1x128xf32> to vector<128x128xf32>
    %13 = arith.addf %10, %12 : vector<128x128xf32>
    %cst_10 = arith.constant 0.000000e+00 : f32
    %14 = vector.broadcast %cst_10 : f32 to vector<128x128xf32>
    %15 = arith.maximumf %13, %14 : vector<128x128xf32>
    %16 = arith.truncf %15 : vector<128x128xf32> to vector<128x128xbf16>
    %c0_11 = arith.constant 0 : index
    %c0_12 = arith.constant 0 : index
    %17 = vector.load %arg4[%c0_11, %c0_12] : memref<128x128xbf16, #tpu.memory_space<vmem>>, vector<128x128xbf16>
    %cst_13 = arith.constant dense<0.000000e+00> : vector<128x128xf32>
    %18 = tpu.matmul %16, %17, %cst_13 {dimension_numbers = #tpu.dot_dimension_numbers<[1], [0], [0], [1], [0, 0, 1, 1], [], []>} : vector<128x128xbf16>, vector<128x128xbf16>, vector<128x128xf32> -> vector<128x128xf32>
    %c2 = arith.constant 2 : index
    %c0_14 = arith.constant 0 : index
    %19 = vector.load %arg6[%c2, %c0_14] : memref<4x128xf32, #tpu.memory_space<vmem>>, vector<1x128xf32>
    %20 = vector.broadcast %19 : vector<1x128xf32> to vector<128x128xf32>
    %21 = arith.addf %18, %20 : vector<128x128xf32>
    %cst_15 = arith.constant 0.000000e+00 : f32
    %22 = vector.broadcast %cst_15 : f32 to vector<128x128xf32>
    %23 = arith.maximumf %21, %22 : vector<128x128xf32>
    %24 = arith.truncf %23 : vector<128x128xf32> to vector<128x128xbf16>
    %c0_16 = arith.constant 0 : index
    %c0_17 = arith.constant 0 : index
    %25 = vector.load %arg5[%c0_16, %c0_17] : memref<128x128xbf16, #tpu.memory_space<vmem>>, vector<128x128xbf16>
    %cst_18 = arith.constant dense<0.000000e+00> : vector<128x128xf32>
    %26 = tpu.matmul %24, %25, %cst_18 {dimension_numbers = #tpu.dot_dimension_numbers<[1], [0], [0], [1], [0, 0, 1, 1], [], []>} : vector<128x128xbf16>, vector<128x128xbf16>, vector<128x128xf32> -> vector<128x128xf32>
    %c3 = arith.constant 3 : index
    %c0_19 = arith.constant 0 : index
    %27 = vector.load %arg6[%c3, %c0_19] : memref<4x128xf32, #tpu.memory_space<vmem>>, vector<1x128xf32>
    %28 = vector.broadcast %27 : vector<1x128xf32> to vector<128x128xf32>
    %29 = arith.addf %26, %28 : vector<128x128xf32>
    %c0_20 = arith.constant 0 : index
    %c0_21 = arith.constant 0 : index
    %30 = vector.load %arg7[%c0_20, %c0_21] : memref<128x128xf32, #tpu.memory_space<vmem>>, vector<128x128xf32>
    tpu.vector_store %arg7[%c0_20, %c0_21], %29 {strides = array<i32>} : memref<128x128xf32, #tpu.memory_space<vmem>>, vector<128x128xf32>,
    return
  }
  func.func @transform_0(%arg0: i32) -> (i32, i32) {
    %c0_i32 = arith.constant 0 : i32
    %c0_i32_0 = arith.constant 0 : i32
    return %arg0, %c0_i32 : i32, i32
  }
  func.func @transform_1(%arg0: i32) -> (i32, i32) {
    %c0_i32 = arith.constant 0 : i32
    %c0_i32_0 = arith.constant 0 : i32
    %c0_i32_1 = arith.constant 0 : i32
    return %c0_i32, %c0_i32_0 : i32, i32
  }
  func.func @transform_2(%arg0: i32) -> (i32, i32) {
    %c0_i32 = arith.constant 0 : i32
    %c0_i32_0 = arith.constant 0 : i32
    %c0_i32_1 = arith.constant 0 : i32
    return %c0_i32, %c0_i32_0 : i32, i32
  }
  func.func @transform_3(%arg0: i32) -> (i32, i32) {
    %c0_i32 = arith.constant 0 : i32
    %c0_i32_0 = arith.constant 0 : i32
    %c0_i32_1 = arith.constant 0 : i32
    return %c0_i32, %c0_i32_0 : i32, i32
  }
  func.func @transform_4(%arg0: i32) -> (i32, i32) {
    %c0_i32 = arith.constant 0 : i32
    %c0_i32_0 = arith.constant 0 : i32
    %c0_i32_1 = arith.constant 0 : i32
    return %c0_i32, %c0_i32_0 : i32, i32
  }
  func.func @transform_5(%arg0: i32) -> (i32, i32) {
    %c0_i32 = arith.constant 0 : i32
    %c0_i32_0 = arith.constant 0 : i32
    %c0_i32_1 = arith.constant 0 : i32
    return %c0_i32, %c0_i32_0 : i32, i32
  }
  func.func @transform_6(%arg0: i32) -> (i32, i32) {
    %c0_i32 = arith.constant 0 : i32
    %c0_i32_0 = arith.constant 0 : i32
    return %arg0, %c0_i32 : i32, i32
  }
}

</mosaic_0001>

<bundles_post_ra>
// kernel: tpu_custom_call.1
= control target key start
LH: loop header
LB: loop body
LE: loop exit
PB: predicated region body
PF: predicated region fallthrough
CT: control target
= control target key end

     0   :  { %11 = vsyncpa [#allocation3], 0  ;;  %s1942_s0 = inlined_call_operand.vmem [shape: bf16[256,64], index: 0, kind: input, shape index: {}]   ;;  %s1943_s1 = inlined_call_operand.hbm [shape: bf16[64,128], index: 1, kind: input, shape index: {}]   ;;  %s1944_s2 = inlined_call_operand.vmem [shape: bf16[128,128], index: 2, kind: input, shape index: {}]   ;;  %s1945_s3 = inlined_call_operand.vmem [shape: bf16[128,128], index: 3, kind: input, shape index: {}]   ;;  %s1946_s4 = inlined_call_operand.vmem [shape: bf16[128,128], index: 4, kind: input, shape index: {}]   ;;  %s1947_s5 = inlined_call_operand.vmem [shape: f32[4,128], index: 5, kind: input, shape index: {}]   ;;  %s1948_s6 = inlined_call_operand.hbm [shape: f32[256,128], index: 6, kind: output, shape index: {}]  }
   0x1   :  { %12 = vsyncpa [#allocation4], 0 }
   0x2   :  { %14 = vsyncpa [#allocation4 + $0x1], 0  ;;  %s1644_s21 = smov 0   ;;  %s1646_s22 = smov 0  }
   0x3   :  { %s1648_s23 = smov 0   ;;  %s1650_s24 = smov 0  }
   0x4 LB: > { %s1665_s25 = sadd.s32 4294967295, %s1601_s24   ;;  %s1158_s26 = sadd.s32 4294967294, %s1601_s24   ;;  %s1601_s24 = sphi %s1650_s24, %s1964_s24   ;;  %s1597_s23 = sphi %s1648_s23, %s1963_s23   ;;  %s1593_s22 = sphi %s1646_s22, %s1962_s22   ;;  %s1589_s21 = sphi %s1644_s21, %s1961_s21  }
   0x5   : > { %s1669_s27 = sadd.s32 1, %s1601_s24   ;;  %s158_s28 = sadd.s32 1, %s1597_s23 }
   0x6   : > { %s155_s29 = ssub.s32 %s1601_s24, %s1669_s27  ;;  %p168_p0 = scmp.ne.s32.totalorder %s1597_s23, %s1593_s22 }
   0x7   : > { %p156_p1 = scmp.eq.s32.totalorder %s155_s29, 0  ;;  %p169_p2 = scmp.eq.s32.totalorder %s1665_s25, 1 }
   0x8   : > { %p174_p3 = scmp.ne.s32.totalorder %s1593_s22, %s1589_s21  ;;  %p175_p4 = scmp.eq.s32.totalorder %s1158_s26, 1 }
   0x9   : > { %s1680_s30 = scalar_select %p156_p1, %s1597_s23, %s158_s28  }
   0xa   : > { %p1682_p5 = por %p169_p2, %p168_p0  ;;  %p1686_p6 = por %p175_p4, %p174_p3 }
   0xb   : > { %p1159_p7 = scmp.ge.s32.totalorder %s1601_s24, 1  ;;  %p182_p8 = scmp.lt.s32.totalorder %s1601_s24, 3 }
   0xc   : > { %s1952_s7 = scalar_select %p1682_p5, 1, 0 }
   0xd   : > { %s1953_s8 = scalar_select %p1686_p6, 1, 0 }
   0xe   : > { %p1949_p9 = scmp.eq.s32.totalorder %s1665_s25, 0  ;;  %p1693_p10 = pnand %p1159_p7, %p182_p8 }
   0xf   : > { %s1603_s10 = smov [#allocation2]   ;;  %s1507_s15 = scalar_lea.hbm %s1943_s1, 512 }
  0x10   : > { %s1954_s9 = scalar_select %p1693_p10, 1, 0 }
  0x11   : > { %s194_s11 = sshll.u32 %s1603_s10, 4  ;;  %p1423_p11 = pneg %p1693_p10  ;;  %s195_s11 = int_to_ptr.vmem [resolvable:$true] %s194_s11 }
  0x12   : > { %p1508_p13 = scmp.ne.s32.totalorder %s1943_s1, %s1507_s15  ;;  %p1514_p3 = scmp.lt.u32.totalorder %s1507_s15, %s1943_s1 }
  0x13   : > { %p1701_p12 = pnand %p1949_p9, %p1423_p11 }
  0x15   : > { %p1509_p0 = pneg %p1701_p12 }
  0x17   : > { %p1510_p1 = pnand %p1509_p0, %p1508_p13 }
  0x19   : > { %p1511_p2 = pneg %p1510_p1 }
  0x1b   : > { %p1516_p4 = pnand %p1514_p3, %p1511_p2 }
  0x1d   : > { %1519 = shalt.err (!%p1516_p4)
}
  0x1e   : > { %s1520_s20 = scalar_lea.vmem %s195_s11, 512  ;;  %p1528_p9 = scmp.lt.s32.totalorder %s195_s11, %s195_s11 }
  0x1f   : > { %p1521_p7 = scmp.ne.s32.totalorder %s195_s11, %s1520_s20  ;;  %p1529_p6 = scmp.lt.s32.totalorder %s1520_s20, %s1520_s20 }
  0x21   : > { %p1523_p8 = pnand %p1521_p7, %p1509_p0  ;;  %p1530_p5 = por %p1529_p6, %p1528_p9 }
  0x23   : > { %p1524_p11 = pneg %p1523_p8 }
  0x25   : > { %p1531_p10 = pnand %p1530_p5, %p1524_p11 }
  0x27   : > { %1534 = shalt.err (!%p1531_p10)
}
  0x28   : > { %s1604_s26 = smov 64   ;;  %s1605_s28 = smov 4  }
  0x29   : > { %1426 = dma.hbm_to_vmem [thread:$0]  (!%p1701_p12), %s1943_s1, 512, %s195_s11, [#allocation3], %s1604_s26, %s1604_s26, %s1605_s28  }
  0x2a   : > { %p1956_p13 = scmp.ne.s32.totalorder %s1954_s9, 0 }
  0x2b   : > { %p1957_p1 = scmp.eq.s32.totalorder (!%p1956_p13), %s1665_s25, 0 }
  0x2c   : > { %231 = sbr.rel (%p1956_p13) target bundleno = 991 (0x3df), region = 44 }
  0x33   : > { %1580 = dma.done.wait (%p1957_p1), [#allocation3], 512   ;;  %p1958_p0 = pmov %p1957_p1 }
  0x34   : > { %s1165_s13 = sshll.u32 %s1665_s25, 4  ;;  %v1471_v0 = vld [vmem:[#allocation2] sm:$0xff]   ;;  %v1472_v1 = vld [vmem:[#allocation2 + $0x8] sm:$0xff]   ;;  %v1473_v2 = vld [vmem:[#allocation2 + $0x10] sm:$0xff]   ;;  %vm362_vm0 = vcmask 523264   ;;  %s258_s10 = sand.u32 1, %s1593_s22  }
  0x35   : > { %1582 = vsyncadd (%p1958_p0), [#allocation3], 4294966784  ;;  %p262_p5 = scmp.lt.s32.totalorder %s1165_s13, 31  ;;  %1281 = vmatprep.subr.bf16.mxu0 %v1471_v0  ;;  %v1474_v4 = vld [vmem:[#allocation2 + $0x18] sm:$0xff]   ;;  %v1483_v5 = vld [vmem:[%s1944_s2] sm:$0xff]   ;;  %s1220_s9 = sshll.u32 %s1665_s25, 11 }
  0x36   : > { %1282 = vmatpush3.bf16.msra.mxu0 %v1471_v0  ;;  %v1484_v6 = vld [vmem:[%s1944_s2 + $0x8] sm:$0xff]   ;;  %1305 = vmatprep.subr.bf16.mxu1 %v1483_v5  ;;  %v1485_v9 = vld [vmem:[%s1944_s2 + $0x10] sm:$0xff]   ;;  %v1486_v10 = vld [vmem:[%s1944_s2 + $0x18] sm:$0xff]   ;;  %s1892_s19 = scalar_lea.hbm %s1948_s6, %s1220_s9  ;;  %s1901_s25 = scalar_lea.sflag [#allocation4], %s258_s10 }
  0x37   : > { %s1966_s13 = smov (!%p262_p5, %s1165_s13), 31  ;;  %1283 = vmatprep.subr.bf16.mxu0 %v1472_v1  ;;  %1306 = vmatpush3.bf16.msra.mxu1 %v1483_v5  ;;  %v1487_v13 = vld [vmem:[%s1944_s2 + $0x20] sm:$0xff]   ;;  %v1488_v14 = vld [vmem:[%s1944_s2 + $0x28] sm:$0xff]   ;;  %v1489_v18 = vld [vmem:[%s1944_s2 + $0x30] sm:$0xff]   ;;  %p1959_p9 = scmp.ne.s32.totalorder %s1952_s7, 0 }
  0x38   : > { %s1166_s14 = sshll.u32 %s1966_s13, 2  ;;  %1307 = vmatprep.subr.bf16.mxu1 %v1484_v6  ;;  %v1490_v19 = vld [vmem:[%s1944_s2 + $0x38] sm:$0xff]   ;;  %v1491_v20 = vld [vmem:[%s1945_s3] sm:$0xff]   ;;  %v1492_v21 = vld [vmem:[%s1945_s3 + $0x8] sm:$0xff]   ;;  %s1164_s13 = sshll.u32 %s258_s10, 7 }
  0x39   : > { %s1731_s11 = scalar_lea.vmem %s1942_s0, %s1166_s14  ;;  %v1493_v22 = vld [vmem:[%s1945_s3 + $0x10] sm:$0xff]   ;;  %v1494_v23 = vld [vmem:[%s1945_s3 + $0x18] sm:$0xff]   ;;  %v1495_v24 = vld [vmem:[%s1945_s3 + $0x20] sm:$0xff]   ;;  %s1872_s15 = scalar_lea.vmem [#allocation5], %s1164_s13 }
  0x3a   : > { %v1475_v3 = vld [vmem:[%s1731_s11] sm:$0xff]   ;;  %1284 = vmatpush3.bf16.msra.mxu0 %v1472_v1  ;;  %v1476_v7 = vld [vmem:[%s1731_s11 + $0x8] sm:$0xff]   ;;  %v1477_v8 = vld [vmem:[%s1731_s11 + $0x10] sm:$0xff]   ;;  %s1084_s16 = sshll.u32 %s1872_s15, 4  ;;  %s1606_s20 = smov [#allocation5]   ;;  %s1894_s16 = int_to_ptr.vmem [resolvable:$true] %s1084_s16 }
  0x3b   : > { %1289 = vmatprep.mubr.msk.bf16.mxu0 %vm362_vm0, %v1475_v3  ;;  %1285 = vmatprep.subr.bf16.mxu0 %v1473_v2  ;;  %v1478_v11 = vld [vmem:[%s1731_s11 + $0x18] sm:$0xff]   ;;  %v1479_v12 = vld [vmem:[%s1731_s11 + $0x20] sm:$0xff]   ;;  %v1480_v15 = vld [vmem:[%s1731_s11 + $0x28] sm:$0xff]   ;;  %s1539_s26 = sshll.u32 %s1606_s20, 4  ;;  %s1540_s26 = int_to_ptr.vmem [resolvable:$false] %s1539_s26 }
  0x3c   : > { %1308 = vmatpush3.bf16.msra.mxu1 %v1484_v6  ;;  %v1481_v16 = vld [vmem:[%s1731_s11 + $0x30] sm:$0xff]   ;;  %v1482_v17 = vld [vmem:[%s1731_s11 + $0x38] sm:$0xff]   ;;  %v1496_v25 = vld [vmem:[%s1945_s3 + $0x28] sm:$0xff]   ;;  %s1535_s11 = scalar_lea.vmem %s1894_s16, 2048  ;;  %s1541_s28 = scalar_lea.vmem %s1540_s26, 4096 }
  0x3d   : > { %1309 = vmatprep.subr.bf16.mxu1 %v1485_v9  ;;  %v1167_v26 = vld [vmem:[%s1947_s5] ss:$0 sm:$0xff]  ;;  %p1536_p6 = scmp.ne.s32.totalorder %s1894_s16, %s1535_s11  ;;  %p1542_p2 = scmp.lt.s32.totalorder %s1894_s16, %s1540_s26 }
  0x3e   : > { %1286 = vmatpush3.bf16.msra.mxu0 %v1473_v2  ;;  %p1543_p3 = scmp.lt.s32.totalorder %s1541_s28, %s1535_s11 }
  0x3f   : > { %1287 = vmatprep.subr.bf16.mxu0 %v1474_v4  ;;  %p1537_p10 = pnand %p1536_p6, %p1959_p9 }
  0x40   : > { %1310 = vmatpush3.bf16.msra.mxu1 %v1485_v9  ;;  %p1544_p4 = por %p1543_p3, %p1542_p2 }
  0x41   : > { %1311 = vmatprep.subr.bf16.mxu1 %v1486_v10  ;;  %p1538_p12 = pneg %p1537_p10 }
  0x42   : > { %1288 = vmatpush3.bf16.msra.mxu0 %v1474_v4 }
  0x43   : > { %1337 = vmatprep.subr.bf16.mxu0 %v1491_v20  ;;  %p1545_p7 = pnand %p1544_p4, %p1538_p12 }
  0x44   : > { %1312 = vmatpush3.bf16.msra.mxu1 %v1486_v10 }
  0x45   : > { %1290 = vmatmul.mubr.msk.bf16.vlgmr.msra.gmra.mrb[0].mxu0 %vm362_vm0, %v1476_v7  ;;  %1313 = vmatprep.subr.bf16.mxu1 %v1487_v13 }
  0x46   : > { %1293 = vmatprep.mubr.msk.bf16.mxu0 %vm362_vm0, %v1477_v8  ;;  %1338 = vmatpush3.bf16.msra.mxu0 %v1491_v20  ;;  %v1498_v20 = vld [vmem:[%s1945_s3 + $0x38] sm:$0xff]  }
  0x47   : > { %1339 = vmatprep.subr.bf16.mxu0 %v1492_v21 }
  0x48   : > { %1314 = vmatpush3.bf16.msra.mxu1 %v1487_v13 }
  0x49   : > { %1315 = vmatprep.subr.bf16.mxu1 %v1488_v14 }
  0x4a   : > { %1340 = vmatpush3.bf16.msra.mxu0 %v1492_v21  ;;  %v1499_v21 = vld [vmem:[%s1946_s4] sm:$0xff]  }
  0x4b   : > { %1341 = vmatprep.subr.bf16.mxu0 %v1493_v22 }
  0x4c   : > { %1316 = vmatpush3.bf16.msra.mxu1 %v1488_v14 }
  0x4d   : > { %1294 = vmatmul.mubr.msk.bf16.gmra.mrb[4].mxu0 %vm362_vm0, %v1478_v11  ;;  %1317 = vmatprep.subr.bf16.mxu1 %v1489_v18 }
  0x4e   : > { %1297 = vmatprep.mubr.msk.bf16.mxu0 %vm362_vm0, %v1479_v12  ;;  %1342 = vmatpush3.bf16.msra.mxu0 %v1493_v22  ;;  %v1500_v22 = vld [vmem:[%s1946_s4 + $0x8] sm:$0xff]  }
  0x4f   : > { %1343 = vmatprep.subr.bf16.mxu0 %v1494_v23 }
  0x50   : > { %1318 = vmatpush3.bf16.msra.mxu1 %v1489_v18 }
  0x51   : > { %1319 = vmatprep.subr.bf16.mxu1 %v1490_v19 }
  0x52   : > { %1344 = vmatpush3.bf16.msra.mxu0 %v1494_v23  ;;  %v1501_v23 = vld [vmem:[%s1946_s4 + $0x10] sm:$0xff]  }
  0x53   : > { %1345 = vmatprep.subr.bf16.mxu0 %v1495_v24 }
  0x54   : > { %1320 = vmatpush3.bf16.msra.mxu1 %v1490_v19  ;;  %v1497_v19 = vld [vmem:[%s1945_s3 + $0x30] sm:$0xff]  }
  0x55   : > { %1298 = vmatmul.mubr.msk.bf16.gmra.mrb[8].mxu0 %vm362_vm0, %v1480_v15  ;;  %1401 = vmatprep.subr.bf16.mxu1 %v1499_v21 }
  0x56   : > { %1301 = vmatprep.mubr.msk.bf16.mxu0 %vm362_vm0, %v1481_v16  ;;  %1346 = vmatpush3.bf16.msra.mxu0 %v1495_v24  ;;  %v1812_v24 = vld [vmem:[%s1946_s4 + $0x18] sm:$0xff]  }
  0x57   : > { %1347 = vmatprep.subr.bf16.mxu0 %v1496_v25 }
  0x5a   : > { %1348 = vmatpush3.bf16.msra.mxu0 %v1496_v25  ;;  %v1818_v25 = vld [vmem:[%s1946_s4 + $0x20] sm:$0xff]  }
  0x5b   : > { %1349 = vmatprep.subr.bf16.mxu0 %v1497_v19 }
  0x5d   : > { %1302 = vmatmul.mubr.msk.bf16.gmra.mrb[12].mxu0 %vm362_vm0, %v1482_v17 }
  0x5e   : > { %1350 = vmatpush3.bf16.msra.mxu0 %v1497_v19 }
  0x5f   : > { %1351 = vmatprep.subr.bf16.mxu0 %v1498_v20 }
  0x62   : > { %1352 = vmatpush3.bf16.msra.mxu0 %v1498_v20  ;;  %v1505_v20 = vld [vmem:[%s1946_s4 + $0x30] sm:$0xff]  }
  0x63   : > { %1369 = vmatprep.subr.bf16.mxu0 %v1499_v21 }
 0x118   : > { %v1291_v27 = vpop.f32.mrb[0].mxu0 }
 0x119   : > { %v430_v28 = vadd.f32 %v1291_v27, %v1167_v26  ;;  %v421_v29 = vpop.f32.mrb[1].mxu0  ;;  %v1833_v27 = vld [vmem:[%s1947_s5 + $0x1] ss:$0 sm:$0xff] }
 0x11a   : > { %v422_v30 = vadd.f32 %v1167_v26, %v421_v29  ;;  %v1292_v31 = vpop.f32.mrb[2].mxu0 }
 0x11b   : > { %v433_v32 = vadd.f32 %v1292_v31, %v1167_v26  ;;  %v424_v33 = vpop.f32.mrb[3].mxu0  ;;  %v486_v35 = vmax.f32 %v430_v28, 0.0 }
 0x11c   : > { %v425_v34 = vadd.f32 %v1167_v26, %v424_v33  ;;  %v484_v37 = vmax.f32 %v422_v30, 0.0 }
 0x11d   : > { %v487_v36 = vmax.f32 %v433_v32, 0.0 }
 0x11e   : > { %v485_v38 = vmax.f32 %v425_v34, 0.0 }
 0x11f   : > { %v501_v39 = vpack.c.bf16 %v487_v36, %v486_v35 }
 0x120   : > { %v1295_v40 = vpop.f32.mrb[4].mxu0  ;;  %v500_v41 = vpack.c.bf16 %v485_v38, %v484_v37 }
 0x121   : > { %v446_v42 = vadd.f32 %v1295_v40, %v1167_v26  ;;  %v437_v43 = vpop.f32.mrb[5].mxu0 }
 0x122   : > { %v438_v44 = vadd.f32 %v1167_v26, %v437_v43  ;;  %v1296_v45 = vpop.f32.mrb[6].mxu0  ;;  %1321 = vmatprep.mubr.bf16.mxu1 %v500_v41 }
 0x123   : > { %v449_v46 = vadd.f32 %v1296_v45, %v1167_v26  ;;  %v440_v47 = vpop.f32.mrb[7].mxu0  ;;  %1322 = vmatmul.mubr.bf16.vlgmr.msra.gmra.mrb[0].mxu1 %v501_v39  ;;  %v490_v49 = vmax.f32 %v446_v42, 0.0 }
 0x124   : > { %v441_v48 = vadd.f32 %v1167_v26, %v440_v47  ;;  %v488_v51 = vmax.f32 %v438_v44, 0.0  ;;  %1409 = vmatpush3.bf16.msra.mxu1 %v1499_v21 }
 0x125   : > { %v491_v50 = vmax.f32 %v449_v46, 0.0  ;;  %1402 = vmatprep.subr.bf16.mxu1 %v1500_v22 }
 0x126   : > { %v489_v52 = vmax.f32 %v441_v48, 0.0 }
 0x127   : > { %v503_v53 = vpack.c.bf16 %v491_v50, %v490_v49 }
 0x128   : > { %v502_v54 = vpack.c.bf16 %v489_v52, %v488_v51  ;;  %v1299_v55 = vpop.f32.mrb[8].mxu0  ;;  %1410 = vmatpush3.bf16.msra.mxu1 %v1500_v22 }
 0x129   : > { %v462_v56 = vadd.f32 %v1299_v55, %v1167_v26  ;;  %v453_v57 = vpop.f32.mrb[9].mxu0  ;;  %1403 = vmatprep.subr.bf16.mxu1 %v1501_v23 }
 0x12a   : > { %v454_v58 = vadd.f32 %v1167_v26, %v453_v57  ;;  %v1300_v59 = vpop.f32.mrb[10].mxu0  ;;  %1325 = vmatprep.mubr.bf16.mxu1 %v502_v54 }
 0x12b   : > { %v465_v60 = vadd.f32 %v1300_v59, %v1167_v26  ;;  %v456_v61 = vpop.f32.mrb[11].mxu0  ;;  %1326 = vmatmul.mubr.bf16.gmra.mrb[4].mxu1 %v503_v53  ;;  %v494_v63 = vmax.f32 %v462_v56, 0.0 }
 0x12c   : > { %v457_v62 = vadd.f32 %v1167_v26, %v456_v61  ;;  %v492_v1 = vmax.f32 %v454_v58, 0.0  ;;  %1411 = vmatpush3.bf16.msra.mxu1 %v1501_v23 }
 0x12d   : > { %v495_v0 = vmax.f32 %v465_v60, 0.0  ;;  %1404 = vmatprep.subr.bf16.mxu1 %v1812_v24 }
 0x12e   : > { %v493_v2 = vmax.f32 %v457_v62, 0.0 }
 0x12f   : > { %v505_v3 = vpack.c.bf16 %v495_v0, %v494_v63 }
 0x130   : > { %v504_v4 = vpack.c.bf16 %v493_v2, %v492_v1  ;;  %v1303_v5 = vpop.f32.mrb[12].mxu0  ;;  %1412 = vmatpush3.bf16.msra.mxu1 %v1812_v24 }
 0x131   : > { %v478_v6 = vadd.f32 %v1303_v5, %v1167_v26  ;;  %v469_v7 = vpop.f32.mrb[13].mxu0  ;;  %1405 = vmatprep.subr.bf16.mxu1 %v1818_v25 }
 0x132   : > { %v470_v8 = vadd.f32 %v1167_v26, %v469_v7  ;;  %v1304_v9 = vpop.f32.mrb[14].mxu0  ;;  %1329 = vmatprep.mubr.bf16.mxu1 %v504_v4 }
 0x133   : > { %v481_v10 = vadd.f32 %v1304_v9, %v1167_v26  ;;  %v472_v11 = vpop.f32.mrb[15].mxu0  ;;  %1330 = vmatmul.mubr.bf16.gmra.mrb[8].mxu1 %v505_v3  ;;  %v498_v13 = vmax.f32 %v478_v6, 0.0 }
 0x134   : > { %v473_v12 = vadd.f32 %v1167_v26, %v472_v11  ;;  %v496_v15 = vmax.f32 %v470_v8, 0.0  ;;  %v1825_v26 = vld [vmem:[%s1946_s4 + $0x28] sm:$0xff]   ;;  %1413 = vmatpush3.bf16.msra.mxu1 %v1818_v25 }
 0x135   : > { %v499_v14 = vmax.f32 %v481_v10, 0.0  ;;  %1406 = vmatprep.subr.bf16.mxu1 %v1825_v26 }
 0x136   : > { %v497_v16 = vmax.f32 %v473_v12, 0.0 }
 0x137   : > { %v507_v17 = vpack.c.bf16 %v499_v14, %v498_v13 }
 0x138   : > { %v506_v18 = vpack.c.bf16 %v497_v16, %v496_v15  ;;  %1414 = vmatpush3.bf16.msra.mxu1 %v1825_v26 }
 0x139   : > { %1407 = vmatprep.subr.bf16.mxu1 %v1505_v20 }
 0x13a   : > { %1333 = vmatprep.mubr.bf16.mxu1 %v506_v18 }
 0x13b   : > { %1334 = vmatmul.mubr.bf16.gmra.mrb[12].mxu1 %v507_v17 }
 0x13c   : > { %1415 = vmatpush3.bf16.msra.mxu1 %v1505_v20 }
 0x1f6   : > { %v1323_v28 = vpop.f32.mrb[0].mxu1 }
 0x1f7   : > { %v620_v29 = vadd.f32 %v1323_v28, %v1833_v27  ;;  %v611_v30 = vpop.f32.mrb[1].mxu1 }
 0x1f8   : > { %v612_v31 = vadd.f32 %v1833_v27, %v611_v30  ;;  %v1324_v32 = vpop.f32.mrb[2].mxu1 }
 0x1f9   : > { %v623_v33 = vadd.f32 %v1324_v32, %v1833_v27  ;;  %v614_v34 = vpop.f32.mrb[3].mxu1  ;;  %v676_v36 = vmax.f32 %v620_v29, 0.0 }
 0x1fa   : > { %v615_v35 = vadd.f32 %v1833_v27, %v614_v34  ;;  %v674_v38 = vmax.f32 %v612_v31, 0.0 }
 0x1fb   : > { %v677_v37 = vmax.f32 %v623_v33, 0.0 }
 0x1fc   : > { %v675_v39 = vmax.f32 %v615_v35, 0.0 }
 0x1fd   : > { %v691_v40 = vpack.c.bf16 %v677_v37, %v676_v36 }
 0x1fe   : > { %v690_v41 = vpack.c.bf16 %v675_v39, %v674_v38  ;;  %v1327_v42 = vpop.f32.mrb[4].mxu1 }
 0x1ff   : > { %v636_v43 = vadd.f32 %v1327_v42, %v1833_v27  ;;  %v627_v44 = vpop.f32.mrb[5].mxu1 }
 0x200   : > { %v628_v45 = vadd.f32 %v1833_v27, %v627_v44  ;;  %v1328_v46 = vpop.f32.mrb[6].mxu1  ;;  %1353 = vmatprep.mubr.bf16.mxu0 %v690_v41 }
 0x201   : > { %v639_v47 = vadd.f32 %v1328_v46, %v1833_v27  ;;  %v630_v48 = vpop.f32.mrb[7].mxu1  ;;  %1354 = vmatmul.mubr.bf16.vlgmr.msra.gmra.mrb[16].mxu0 %v691_v40  ;;  %v680_v50 = vmax.f32 %v636_v43, 0.0 }
 0x202   : > { %v631_v49 = vadd.f32 %v1833_v27, %v630_v48  ;;  %1370 = vmatpush3.bf16.msra.mxu0 %v1499_v21  ;;  %v678_v52 = vmax.f32 %v628_v45, 0.0  ;;  %v1506_v21 = vld [vmem:[%s1946_s4 + $0x38] sm:$0xff]  }
 0x203   : > { %v681_v51 = vmax.f32 %v639_v47, 0.0  ;;  %1371 = vmatprep.subr.bf16.mxu0 %v1500_v22  ;;  %1408 = vmatprep.subr.bf16.mxu1 %v1506_v21 }
 0x204   : > { %v679_v53 = vmax.f32 %v631_v49, 0.0  ;;  %1416 = vmatpush3.bf16.msra.mxu1 %v1506_v21 }
 0x205   : > { %v693_v54 = vpack.c.bf16 %v681_v51, %v680_v50 }
 0x206   : > { %v692_v55 = vpack.c.bf16 %v679_v53, %v678_v52  ;;  %v1331_v56 = vpop.f32.mrb[8].mxu1  ;;  %1372 = vmatpush3.bf16.msra.mxu0 %v1500_v22  ;;  %v1197_v22 = vld [vmem:[%s1947_s5 + $0x2] ss:$0 sm:$0xff] }
 0x207   : > { %v652_v57 = vadd.f32 %v1331_v56, %v1833_v27  ;;  %v643_v58 = vpop.f32.mrb[9].mxu1  ;;  %1373 = vmatprep.subr.bf16.mxu0 %v1501_v23 }
 0x208   : > { %v644_v59 = vadd.f32 %v1833_v27, %v643_v58  ;;  %v1332_v60 = vpop.f32.mrb[10].mxu1  ;;  %1357 = vmatprep.mubr.bf16.mxu0 %v692_v55 }
 0x209   : > { %v655_v61 = vadd.f32 %v1332_v60, %v1833_v27  ;;  %v646_v62 = vpop.f32.mrb[11].mxu1  ;;  %1358 = vmatmul.mubr.bf16.gmra.mrb[20].mxu0 %v693_v54  ;;  %v684_v0 = vmax.f32 %v652_v57, 0.0 }
 0x20a   : > { %v647_v63 = vadd.f32 %v1833_v27, %v646_v62  ;;  %1374 = vmatpush3.bf16.msra.mxu0 %v1501_v23  ;;  %v682_v2 = vmax.f32 %v644_v59, 0.0 }
 0x20b   : > { %v685_v1 = vmax.f32 %v655_v61, 0.0  ;;  %1375 = vmatprep.subr.bf16.mxu0 %v1812_v24 }
 0x20c   : > { %v683_v3 = vmax.f32 %v647_v63, 0.0 }
 0x20d   : > { %v695_v4 = vpack.c.bf16 %v685_v1, %v684_v0 }
 0x20e   : > { %v694_v5 = vpack.c.bf16 %v683_v3, %v682_v2  ;;  %v1335_v6 = vpop.f32.mrb[12].mxu1  ;;  %1376 = vmatpush3.bf16.msra.mxu0 %v1812_v24 }
 0x20f   : > { %v668_v7 = vadd.f32 %v1335_v6, %v1833_v27  ;;  %v659_v8 = vpop.f32.mrb[13].mxu1  ;;  %1377 = vmatprep.subr.bf16.mxu0 %v1818_v25 }
 0x210   : > { %v660_v9 = vadd.f32 %v1833_v27, %v659_v8  ;;  %v1336_v10 = vpop.f32.mrb[14].mxu1  ;;  %1361 = vmatprep.mubr.bf16.mxu0 %v694_v5 }
 0x211   : > { %v671_v11 = vadd.f32 %v1336_v10, %v1833_v27  ;;  %v662_v12 = vpop.f32.mrb[15].mxu1  ;;  %1362 = vmatmul.mubr.bf16.gmra.mrb[24].mxu0 %v695_v4  ;;  %v688_v14 = vmax.f32 %v668_v7, 0.0 }
 0x212   : > { %v663_v13 = vadd.f32 %v1833_v27, %v662_v12  ;;  %1378 = vmatpush3.bf16.msra.mxu0 %v1818_v25  ;;  %v686_v16 = vmax.f32 %v660_v9, 0.0 }
 0x213   : > { %v689_v15 = vmax.f32 %v671_v11, 0.0  ;;  %1379 = vmatprep.subr.bf16.mxu0 %v1825_v26 }
 0x214   : > { %v687_v17 = vmax.f32 %v663_v13, 0.0 }
 0x215   : > { %v697_v18 = vpack.c.bf16 %v689_v15, %v688_v14  ;;  %v1206_v15 = vld [vmem:[%s1947_s5 + $0x3] ss:$0 sm:$0xff] }
 0x216   : > { %v696_v19 = vpack.c.bf16 %v687_v17, %v686_v16  ;;  %1380 = vmatpush3.bf16.msra.mxu0 %v1825_v26 }
 0x217   : > { %1381 = vmatprep.subr.bf16.mxu0 %v1505_v20 }
 0x218   : > { %1365 = vmatprep.mubr.bf16.mxu0 %v696_v19 }
 0x219   : > { %1366 = vmatmul.mubr.bf16.gmra.mrb[28].mxu0 %v697_v18 }
 0x21a   : > { %1382 = vmatpush3.bf16.msra.mxu0 %v1505_v20 }
 0x21b   : > { %1383 = vmatprep.subr.bf16.mxu0 %v1506_v21 }
 0x21e   : > { %1384 = vmatpush3.bf16.msra.mxu0 %v1506_v21 }
 0x2d4   : > { %v1355_v23 = vpop.f32.mrb[16].mxu0 }
 0x2d5   : > { %v810_v24 = vadd.f32 %v1355_v23, %v1197_v22  ;;  %v801_v25 = vpop.f32.mrb[17].mxu0 }
 0x2d6   : > { %v802_v26 = vadd.f32 %v1197_v22, %v801_v25  ;;  %v1356_v27 = vpop.f32.mrb[18].mxu0 }
 0x2d7   : > { %v813_v28 = vadd.f32 %v1356_v27, %v1197_v22  ;;  %v804_v29 = vpop.f32.mrb[19].mxu0  ;;  %v866_v31 = vmax.f32 %v810_v24, 0.0 }
 0x2d8   : > { %v805_v30 = vadd.f32 %v1197_v22, %v804_v29  ;;  %v864_v33 = vmax.f32 %v802_v26, 0.0 }
 0x2d9   : > { %v867_v32 = vmax.f32 %v813_v28, 0.0 }
 0x2da   : > { %v865_v34 = vmax.f32 %v805_v30, 0.0 }
 0x2db   : > { %v881_v35 = vpack.c.bf16 %v867_v32, %v866_v31 }
 0x2dc   : > { %v880_v36 = vpack.c.bf16 %v865_v34, %v864_v33  ;;  %v1359_v37 = vpop.f32.mrb[20].mxu0 }
 0x2dd   : > { %v826_v38 = vadd.f32 %v1359_v37, %v1197_v22  ;;  %v817_v39 = vpop.f32.mrb[21].mxu0 }
 0x2de   : > { %v818_v40 = vadd.f32 %v1197_v22, %v817_v39  ;;  %v1360_v41 = vpop.f32.mrb[22].mxu0  ;;  %1385 = vmatprep.mubr.bf16.mxu0 %v880_v36 }
 0x2df   : > { %v829_v42 = vadd.f32 %v1360_v41, %v1197_v22  ;;  %v820_v43 = vpop.f32.mrb[23].mxu0  ;;  %1386 = vmatmul.mubr.bf16.vlgmr.msra.gmra.mrb[32].mxu0 %v881_v35  ;;  %v870_v45 = vmax.f32 %v826_v38, 0.0 }
 0x2e0   : > { %v821_v44 = vadd.f32 %v1197_v22, %v820_v43  ;;  %v868_v47 = vmax.f32 %v818_v40, 0.0 }
 0x2e1   : > { %v871_v46 = vmax.f32 %v829_v42, 0.0 }
 0x2e2   : > { %v869_v48 = vmax.f32 %v821_v44, 0.0 }
 0x2e3   : > { %v883_v49 = vpack.c.bf16 %v871_v46, %v870_v45 }
 0x2e4   : > { %v882_v50 = vpack.c.bf16 %v869_v48, %v868_v47  ;;  %v1363_v51 = vpop.f32.mrb[24].mxu0 }
 0x2e5   : > { %v842_v52 = vadd.f32 %v1363_v51, %v1197_v22  ;;  %v833_v53 = vpop.f32.mrb[25].mxu0 }
 0x2e6   : > { %v834_v54 = vadd.f32 %v1197_v22, %v833_v53  ;;  %v1364_v55 = vpop.f32.mrb[26].mxu0  ;;  %1389 = vmatprep.mubr.bf16.mxu1 %v882_v50 }
 0x2e7   : > { %v845_v56 = vadd.f32 %v1364_v55, %v1197_v22  ;;  %v836_v57 = vpop.f32.mrb[27].mxu0  ;;  %1390 = vmatmul.mubr.bf16.vlgmr.msra.gmra.mrb[16].mxu1 %v883_v49  ;;  %v874_v59 = vmax.f32 %v842_v52, 0.0 }
 0x2e8   : > { %v837_v58 = vadd.f32 %v1197_v22, %v836_v57  ;;  %v872_v61 = vmax.f32 %v834_v54, 0.0 }
 0x2e9   : > { %v875_v60 = vmax.f32 %v845_v56, 0.0 }
 0x2ea   : > { %v873_v62 = vmax.f32 %v837_v58, 0.0 }
 0x2eb   : > { %v885_v63 = vpack.c.bf16 %v875_v60, %v874_v59 }
 0x2ec   : > { %v884_v0 = vpack.c.bf16 %v873_v62, %v872_v61  ;;  %v1367_v1 = vpop.f32.mrb[28].mxu0 }
 0x2ed   : > { %v858_v2 = vadd.f32 %v1367_v1, %v1197_v22  ;;  %v849_v3 = vpop.f32.mrb[29].mxu0 }
 0x2ee   : > { %v850_v4 = vadd.f32 %v1197_v22, %v849_v3  ;;  %v1368_v5 = vpop.f32.mrb[30].mxu0  ;;  %1393 = vmatprep.mubr.bf16.mxu1 %v884_v0 }
 0x2ef   : > { %v861_v6 = vadd.f32 %v1368_v5, %v1197_v22  ;;  %v852_v7 = vpop.f32.mrb[31].mxu0  ;;  %1394 = vmatmul.mubr.bf16.gmra.mrb[20].mxu1 %v885_v63  ;;  %v878_v9 = vmax.f32 %v858_v2, 0.0 }
 0x2f0   : > { %v853_v8 = vadd.f32 %v1197_v22, %v852_v7  ;;  %v876_v11 = vmax.f32 %v850_v4, 0.0 }
 0x2f1   : > { %v879_v10 = vmax.f32 %v861_v6, 0.0 }
 0x2f2   : > { %v877_v12 = vmax.f32 %v853_v8, 0.0 }
 0x2f3   : > { %v887_v13 = vpack.c.bf16 %v879_v10, %v878_v9 }
 0x2f4   : > { %v886_v14 = vpack.c.bf16 %v877_v12, %v876_v11 }
 0x2f6   : > { %1397 = vmatprep.mubr.bf16.mxu1 %v886_v14 }
 0x2f7   : > { %1398 = vmatmul.mubr.bf16.gmra.mrb[24].mxu1 %v887_v13 }
 0x3b2   : > { %v1387_v16 = vpop.f32.mrb[32].mxu0 }
 0x3b3   : > { %v1000_v17 = vadd.f32 %v1387_v16, %v1206_v15  ;;  %v991_v18 = vpop.f32.mrb[33].mxu0 }
 0x3b4   : > { %v992_v19 = vadd.f32 %v1206_v15, %v991_v18  ;;  %v1388_v20 = vpop.f32.mrb[34].mxu0 }
 0x3b5   : > { %1056 = vst [vmem:[%s1872_s15 + $0x10] sm:$0xff] %v1000_v17  ;;  %v1003_v21 = vadd.f32 %v1388_v20, %v1206_v15  ;;  %v994_v22 = vpop.f32.mrb[35].mxu0 }
 0x3b6   : > { %1054 = vst [vmem:[%s1872_s15] sm:$0xff] %v992_v19  ;;  %v995_v23 = vadd.f32 %v1206_v15, %v994_v22 }
 0x3b7   : > { %1057 = vst [vmem:[%s1872_s15 + $0x18] sm:$0xff] %v1003_v21 }
 0x3b8   : > { %1055 = vst [vmem:[%s1872_s15 + $0x8] sm:$0xff] %v995_v23 }
 0x3ba   : > { %v1391_v24 = vpop.f32.mrb[16].mxu1 }
 0x3bb   : > { %v1016_v25 = vadd.f32 %v1391_v24, %v1206_v15  ;;  %v1007_v26 = vpop.f32.mrb[17].mxu1 }
 0x3bc   : > { %v1008_v27 = vadd.f32 %v1206_v15, %v1007_v26  ;;  %v1392_v28 = vpop.f32.mrb[18].mxu1 }
 0x3bd   : > { %1060 = vst [vmem:[%s1872_s15 + $0x30] sm:$0xff] %v1016_v25  ;;  %v1019_v29 = vadd.f32 %v1392_v28, %v1206_v15  ;;  %v1010_v30 = vpop.f32.mrb[19].mxu1 }
 0x3be   : > { %1058 = vst [vmem:[%s1872_s15 + $0x20] sm:$0xff] %v1008_v27  ;;  %v1011_v31 = vadd.f32 %v1206_v15, %v1010_v30 }
 0x3bf   : > { %1061 = vst [vmem:[%s1872_s15 + $0x38] sm:$0xff] %v1019_v29 }
 0x3c0   : > { %1059 = vst [vmem:[%s1872_s15 + $0x28] sm:$0xff] %v1011_v31 }
 0x3c2   : > { %v1395_v32 = vpop.f32.mrb[20].mxu1 }
 0x3c3   : > { %v1032_v33 = vadd.f32 %v1395_v32, %v1206_v15  ;;  %v1023_v34 = vpop.f32.mrb[21].mxu1 }
 0x3c4   : > { %v1024_v35 = vadd.f32 %v1206_v15, %v1023_v34  ;;  %v1396_v36 = vpop.f32.mrb[22].mxu1 }
 0x3c5   : > { %1064 = vst [vmem:[%s1872_s15 + $0x50] sm:$0xff] %v1032_v33  ;;  %v1035_v37 = vadd.f32 %v1396_v36, %v1206_v15  ;;  %v1026_v38 = vpop.f32.mrb[23].mxu1 }
 0x3c6   : > { %1062 = vst [vmem:[%s1872_s15 + $0x40] sm:$0xff] %v1024_v35  ;;  %v1027_v39 = vadd.f32 %v1206_v15, %v1026_v38 }
 0x3c7   : > { %1065 = vst [vmem:[%s1872_s15 + $0x58] sm:$0xff] %v1035_v37 }
 0x3c8   : > { %1063 = vst [vmem:[%s1872_s15 + $0x48] sm:$0xff] %v1027_v39 }
 0x3ca   : > { %v1399_v40 = vpop.f32.mrb[24].mxu1 }
 0x3cb   : > { %v1048_v41 = vadd.f32 %v1399_v40, %v1206_v15  ;;  %v1039_v42 = vpop.f32.mrb[25].mxu1 }
 0x3cc   : > { %v1040_v43 = vadd.f32 %v1206_v15, %v1039_v42  ;;  %v1400_v44 = vpop.f32.mrb[26].mxu1 }
 0x3cd   : > { %1068 = vst [vmem:[%s1872_s15 + $0x70] sm:$0xff] %v1048_v41  ;;  %v1051_v45 = vadd.f32 %v1400_v44, %v1206_v15  ;;  %v1042_v46 = vpop.f32.mrb[27].mxu1 }
 0x3ce   : > { %1066 = vst [vmem:[%s1872_s15 + $0x60] sm:$0xff] %v1040_v43  ;;  %v1043_v47 = vadd.f32 %v1206_v15, %v1042_v46 }
 0x3cf   : > { %1069 = vst [vmem:[%s1872_s15 + $0x78] sm:$0xff] %v1051_v45 }
 0x3d0   : > { %1067 = vst [vmem:[%s1872_s15 + $0x68] sm:$0xff] %v1043_v47 }
 0x3d1   : > { %1548 = shalt.err (!%p1545_p7)
}
 0x3d2   : > { %s1549_s29 = scalar_lea.hbm %s1892_s19, 2048  ;;  %s1553_s14 = scalar_lea.hbm %s1948_s6, 4096 }
 0x3d3   : > { %p1550_p8 = scmp.ne.s32.totalorder %s1892_s19, %s1549_s29  ;;  %p1554_p1 = scmp.lt.u32.totalorder %s1892_s19, %s1948_s6 }
 0x3d4   : > { %p1555_p0 = scmp.lt.u32.totalorder %s1553_s14, %s1549_s29  ;;  %p1557_p6 = scmp.lt.u32.totalorder %s1549_s29, %s1892_s19 }
 0x3d5   : > { %p1551_p11 = pnand %p1550_p8, %p1959_p9 }
 0x3d6   : > { %p1556_p5 = por %p1555_p0, %p1554_p1 }
 0x3d7   : > { %p1552_p13 = pneg %p1551_p11 }
 0x3d8   : > { %p1558_p10 = por %p1557_p6, %p1556_p5 }
 0x3da   : > { %p1559_p12 = pnand %p1558_p10, %p1552_p13 }
 0x3dc   : > { %1562 = shalt.err (!%p1559_p12)
}
 0x3dd   : > { %s1607_s9 = smov 128   ;;  %s1608_s17 = smov 8  }
 0x3de   : > { %1421 = dma.vmem_to_hbm [thread:$0]  (%p1959_p9), %s1894_s16, 2048, %s1892_s19, %s1901_s25, %s1607_s9, %s1607_s9, %s1608_s17  }
 0x3df PF: > { %p1433_p2 = scmp.ge.s32.totalorder %s1601_s24, 2  ;;  %s1099_s18 = sand.u32 1, %s1589_s21  }
 0x3e0   : > { %p1960_p3 = scmp.ne.s32.totalorder %s1953_s8, 0  ;;  %s1100_s11 = scalar_lea.sflag [#allocation4], %s1099_s18 }
 0x3e2   : > { %p1428_p4 = pnand %p1433_p2, %p1960_p3 }
 0x3e4   : > { %1584 = dma.done.wait (!%p1428_p4), %s1100_s11, 2048  }
 0x3e5   : > { %1586 = vsyncadd (!%p1428_p4), %s1100_s11, 4294965248  ;;  %p17_p7 = scmp.ge.s32.totalorder %s1669_s27, 4   ;;  %s1961_s21 = smov %s1593_s22 }
 0x3e6   : > { %s1962_s22 = smov %s1597_s23  ;;  %s1963_s23 = smov %s1680_s30 }
 0x3e7   : > { %s1964_s24 = smov %s1669_s27  ;;  %19 = sbr.rel (!%p17_p7) target bundleno = 4 (0x4), region = 84 }
 0x3ee   :  { %1105 = vsyncpa [#allocation3], 1 }
 0x3ef   :  { %1107 = vsyncpa [#allocation3 + $0x1], 1 }
 0x3f0   :  { %1108 = vsyncpa [#allocation4], 1 }
 0x3f1   :  { %1110 = vsyncpa [#allocation4 + $0x1], 1 }

// kernel: tpu_custom_call.1
= control target key start
LH: loop header
LB: loop body
LE: loop exit
PB: predicated region body
PF: predicated region fallthrough
CT: control target
= control target key end

     0   :  { %11 = vsyncpa [#allocation3], 0  ;;  %s1942_s0 = inlined_call_operand.vmem [shape: bf16[256,64], index: 0, kind: input, shape index: {}]   ;;  %s1943_s1 = inlined_call_operand.hbm [shape: bf16[64,128], index: 1, kind: input, shape index: {}]   ;;  %s1944_s2 = inlined_call_operand.vmem [shape: bf16[128,128], index: 2, kind: input, shape index: {}]   ;;  %s1945_s3 = inlined_call_operand.vmem [shape: bf16[128,128], index: 3, kind: input, shape index: {}]   ;;  %s1946_s4 = inlined_call_operand.vmem [shape: bf16[128,128], index: 4, kind: input, shape index: {}]   ;;  %s1947_s5 = inlined_call_operand.vmem [shape: f32[4,128], index: 5, kind: input, shape index: {}]   ;;  %s1948_s6 = inlined_call_operand.hbm [shape: f32[256,128], index: 6, kind: output, shape index: {}]  }
   0x1   :  { %12 = vsyncpa [#allocation4], 0 }
   0x2   :  { %14 = vsyncpa [#allocation4 + $0x1], 0  ;;  %s1644_s21 = smov 0   ;;  %s1646_s22 = smov 0  }
   0x3   :  { %s1648_s23 = smov 0   ;;  %s1650_s24 = smov 0  }
   0x4 LB: > { %s1665_s25 = sadd.s32 4294967295, %s1601_s24   ;;  %s1158_s26 = sadd.s32 4294967294, %s1601_s24   ;;  %s1601_s24 = sphi %s1650_s24, %s1964_s24   ;;  %s1597_s23 = sphi %s1648_s23, %s1963_s23   ;;  %s1593_s22 = sphi %s1646_s22, %s1962_s22   ;;  %s1589_s21 = sphi %s1644_s21, %s1961_s21  }
   0x5   : > { %s1669_s27 = sadd.s32 1, %s1601_s24   ;;  %s158_s28 = sadd.s32 1, %s1597_s23 }
   0x6   : > { %s155_s29 = ssub.s32 %s1601_s24, %s1669_s27  ;;  %p168_p0 = scmp.ne.s32.totalorder %s1597_s23, %s1593_s22 }
   0x7   : > { %p156_p1 = scmp.eq.s32.totalorder %s155_s29, 0  ;;  %p169_p2 = scmp.eq.s32.totalorder %s1665_s25, 1 }
   0x8   : > { %p174_p3 = scmp.ne.s32.totalorder %s1593_s22, %s1589_s21  ;;  %p175_p4 = scmp.eq.s32.totalorder %s1158_s26, 1 }
   0x9   : > { %s1680_s30 = scalar_select %p156_p1, %s1597_s23, %s158_s28  }
   0xa   : > { %p1682_p5 = por %p169_p2, %p168_p0  ;;  %p1686_p6 = por %p175_p4, %p174_p3 }
   0xb   : > { %p1159_p7 = scmp.ge.s32.totalorder %s1601_s24, 1  ;;  %p182_p8 = scmp.lt.s32.totalorder %s1601_s24, 3 }
   0xc   : > { %s1952_s7 = scalar_select %p1682_p5, 1, 0 }
   0xd   : > { %s1953_s8 = scalar_select %p1686_p6, 1, 0 }
   0xe   : > { %p1949_p9 = scmp.eq.s32.totalorder %s1665_s25, 0  ;;  %p1693_p10 = pnand %p1159_p7, %p182_p8 }
   0xf   : > { %s1603_s10 = smov [#allocation2]   ;;  %s1507_s15 = scalar_lea.hbm %s1943_s1, 512 }
  0x10   : > { %s1954_s9 = scalar_select %p1693_p10, 1, 0 }
  0x11   : > { %s194_s11 = sshll.u32 %s1603_s10, 4  ;;  %p1423_p11 = pneg %p1693_p10  ;;  %s195_s11 = int_to_ptr.vmem [resolvable:$true] %s194_s11 }
  0x12   : > { %p1508_p13 = scmp.ne.s32.totalorder %s1943_s1, %s1507_s15  ;;  %p1514_p3 = scmp.lt.u32.totalorder %s1507_s15, %s1943_s1 }
  0x13   : > { %p1701_p12 = pnand %p1949_p9, %p1423_p11 }
  0x15   : > { %p1509_p0 = pneg %p1701_p12 }
  0x17   : > { %p1510_p1 = pnand %p1509_p0, %p1508_p13 }
  0x19   : > { %p1511_p2 = pneg %p1510_p1 }
  0x1b   : > { %p1516_p4 = pnand %p1514_p3, %p1511_p2 }
  0x1d   : > { %1519 = shalt.err (!%p1516_p4)
}
  0x1e   : > { %s1520_s20 = scalar_lea.vmem %s195_s11, 512  ;;  %p1528_p9 = scmp.lt.s32.totalorder %s195_s11, %s195_s11 }
  0x1f   : > { %p1521_p7 = scmp.ne.s32.totalorder %s195_s11, %s1520_s20  ;;  %p1529_p6 = scmp.lt.s32.totalorder %s1520_s20, %s1520_s20 }
  0x21   : > { %p1523_p8 = pnand %p1521_p7, %p1509_p0  ;;  %p1530_p5 = por %p1529_p6, %p1528_p9 }
  0x23   : > { %p1524_p11 = pneg %p1523_p8 }
  0x25   : > { %p1531_p10 = pnand %p1530_p5, %p1524_p11 }
  0x27   : > { %1534 = shalt.err (!%p1531_p10)
}
  0x28   : > { %s1604_s26 = smov 64   ;;  %s1605_s28 = smov 4  }
  0x29   : > { %1426 = dma.hbm_to_vmem [thread:$0]  (!%p1701_p12), %s1943_s1, 512, %s195_s11, [#allocation3], %s1604_s26, %s1604_s26, %s1605_s28  }
  0x2a   : > { %p1956_p13 = scmp.ne.s32.totalorder %s1954_s9, 0 }
  0x2b   : > { %p1957_p1 = scmp.eq.s32.totalorder (!%p1956_p13), %s1665_s25, 0 }
  0x2c   : > { %231 = sbr.rel (%p1956_p13) target bundleno = 991 (0x3df), region = 44 }
  0x33   : > { %1580 = dma.done.wait (%p1957_p1), [#allocation3], 512   ;;  %p1958_p0 = pmov %p1957_p1 }
  0x34   : > { %s1165_s13 = sshll.u32 %s1665_s25, 4  ;;  %v1471_v0 = vld [vmem:[#allocation2] sm:$0xff]   ;;  %v1472_v1 = vld [vmem:[#allocation2 + $0x8] sm:$0xff]   ;;  %v1473_v2 = vld [vmem:[#allocation2 + $0x10] sm:$0xff]   ;;  %vm362_vm0 = vcmask 523264   ;;  %s258_s10 = sand.u32 1, %s1593_s22  }
  0x35   : > { %1582 = vsyncadd (%p1958_p0), [#allocation3], 4294966784  ;;  %p262_p5 = scmp.lt.s32.totalorder %s1165_s13, 31  ;;  %1281 = vmatprep.subr.bf16.mxu0 %v1471_v0  ;;  %v1474_v4 = vld [vmem:[#allocation2 + $0x18] sm:$0xff]   ;;  %v1483_v5 = vld [vmem:[%s1944_s2] sm:$0xff]   ;;  %s1220_s9 = sshll.u32 %s1665_s25, 11 }
  0x36   : > { %1282 = vmatpush3.bf16.msra.mxu0 %v1471_v0  ;;  %v1484_v6 = vld [vmem:[%s1944_s2 + $0x8] sm:$0xff]   ;;  %1305 = vmatprep.subr.bf16.mxu1 %v1483_v5  ;;  %v1485_v9 = vld [vmem:[%s1944_s2 + $0x10] sm:$0xff]   ;;  %v1486_v10 = vld [vmem:[%s1944_s2 + $0x18] sm:$0xff]   ;;  %s1892_s19 = scalar_lea.hbm %s1948_s6, %s1220_s9  ;;  %s1901_s25 = scalar_lea.sflag [#allocation4], %s258_s10 }
  0x37   : > { %s1966_s13 = smov (!%p262_p5, %s1165_s13), 31  ;;  %1283 = vmatprep.subr.bf16.mxu0 %v1472_v1  ;;  %1306 = vmatpush3.bf16.msra.mxu1 %v1483_v5  ;;  %v1487_v13 = vld [vmem:[%s1944_s2 + $0x20] sm:$0xff]   ;;  %v1488_v14 = vld [vmem:[%s1944_s2 + $0x28] sm:$0xff]   ;;  %v1489_v18 = vld [vmem:[%s1944_s2 + $0x30] sm:$0xff]   ;;  %p1959_p9 = scmp.ne.s32.totalorder %s1952_s7, 0 }
  0x38   : > { %s1166_s14 = sshll.u32 %s1966_s13, 2  ;;  %1307 = vmatprep.subr.bf16.mxu1 %v1484_v6  ;;  %v1490_v19 = vld [vmem:[%s1944_s2 + $0x38] sm:$0xff]   ;;  %v1491_v20 = vld [vmem:[%s1945_s3] sm:$0xff]   ;;  %v1492_v21 = vld [vmem:[%s1945_s3 + $0x8] sm:$0xff]   ;;  %s1164_s13 = sshll.u32 %s258_s10, 7 }
  0x39   : > { %s1731_s11 = scalar_lea.vmem %s1942_s0, %s1166_s14  ;;  %v1493_v22 = vld [vmem:[%s1945_s3 + $0x10] sm:$0xff]   ;;  %v1494_v23 = vld [vmem:[%s1945_s3 + $0x18] sm:$0xff]   ;;  %v1495_v24 = vld [vmem:[%s1945_s3 + $0x20] sm:$0xff]   ;;  %s1872_s15 = scalar_lea.vmem [#allocation5], %s1164_s13 }
  0x3a   : > { %v1475_v3 = vld [vmem:[%s1731_s11] sm:$0xff]   ;;  %1284 = vmatpush3.bf16.msra.mxu0 %v1472_v1  ;;  %v1476_v7 = vld [vmem:[%s1731_s11 + $0x8] sm:$0xff]   ;;  %v1477_v8 = vld [vmem:[%s1731_s11 + $0x10] sm:$0xff]   ;;  %s1084_s16 = sshll.u32 %s1872_s15, 4  ;;  %s1606_s20 = smov [#allocation5]   ;;  %s1894_s16 = int_to_ptr.vmem [resolvable:$true] %s1084_s16 }
  0x3b   : > { %1289 = vmatprep.mubr.msk.bf16.mxu0 %vm362_vm0, %v1475_v3  ;;  %1285 = vmatprep.subr.bf16.mxu0 %v1473_v2  ;;  %v1478_v11 = vld [vmem:[%s1731_s11 + $0x18] sm:$0xff]   ;;  %v1479_v12 = vld [vmem:[%s1731_s11 + $0x20] sm:$0xff]   ;;  %v1480_v15 = vld [vmem:[%s1731_s11 + $0x28] sm:$0xff]   ;;  %s1539_s26 = sshll.u32 %s1606_s20, 4  ;;  %s1540_s26 = int_to_ptr.vmem [resolvable:$false] %s1539_s26 }
  0x3c   : > { %1308 = vmatpush3.bf16.msra.mxu1 %v1484_v6  ;;  %v1481_v16 = vld [vmem:[%s1731_s11 + $0x30] sm:$0xff]   ;;  %v1482_v17 = vld [vmem:[%s1731_s11 + $0x38] sm:$0xff]   ;;  %v1496_v25 = vld [vmem:[%s1945_s3 + $0x28] sm:$0xff]   ;;  %s1535_s11 = scalar_lea.vmem %s1894_s16, 2048  ;;  %s1541_s28 = scalar_lea.vmem %s1540_s26, 4096 }
  0x3d   : > { %1309 = vmatprep.subr.bf16.mxu1 %v1485_v9  ;;  %v1167_v26 = vld [vmem:[%s1947_s5] ss:$0 sm:$0xff]  ;;  %p1536_p6 = scmp.ne.s32.totalorder %s1894_s16, %s1535_s11  ;;  %p1542_p2 = scmp.lt.s32.totalorder %s1894_s16, %s1540_s26 }
  0x3e   : > { %1286 = vmatpush3.bf16.msra.mxu0 %v1473_v2  ;;  %p1543_p3 = scmp.lt.s32.totalorder %s1541_s28, %s1535_s11 }
  0x3f   : > { %1287 = vmatprep.subr.bf16.mxu0 %v1474_v4  ;;  %p1537_p10 = pnand %p1536_p6, %p1959_p9 }
  0x40   : > { %1310 = vmatpush3.bf16.msra.mxu1 %v1485_v9  ;;  %p1544_p4 = por %p1543_p3, %p1542_p2 }
  0x41   : > { %1311 = vmatprep.subr.bf16.mxu1 %v1486_v10  ;;  %p1538_p12 = pneg %p1537_p10 }
  0x42   : > { %1288 = vmatpush3.bf16.msra.mxu0 %v1474_v4 }
  0x43   : > { %1337 = vmatprep.subr.bf16.mxu0 %v1491_v20  ;;  %p1545_p7 = pnand %p1544_p4, %p1538_p12 }
  0x44   : > { %1312 = vmatpush3.bf16.msra.mxu1 %v1486_v10 }
  0x45   : > { %1290 = vmatmul.mubr.msk.bf16.vlgmr.msra.gmra.mrb[0].mxu0 %vm362_vm0, %v1476_v7  ;;  %1313 = vmatprep.subr.bf16.mxu1 %v1487_v13 }
  0x46   : > { %1293 = vmatprep.mubr.msk.bf16.mxu0 %vm362_vm0, %v1477_v8  ;;  %1338 = vmatpush3.bf16.msra.mxu0 %v1491_v20  ;;  %v1498_v20 = vld [vmem:[%s1945_s3 + $0x38] sm:$0xff]  }
  0x47   : > { %1339 = vmatprep.subr.bf16.mxu0 %v1492_v21 }
  0x48   : > { %1314 = vmatpush3.bf16.msra.mxu1 %v1487_v13 }
  0x49   : > { %1315 = vmatprep.subr.bf16.mxu1 %v1488_v14 }
  0x4a   : > { %1340 = vmatpush3.bf16.msra.mxu0 %v1492_v21  ;;  %v1499_v21 = vld [vmem:[%s1946_s4] sm:$0xff]  }
  0x4b   : > { %1341 = vmatprep.subr.bf16.mxu0 %v1493_v22 }
  0x4c   : > { %1316 = vmatpush3.bf16.msra.mxu1 %v1488_v14 }
  0x4d   : > { %1294 = vmatmul.mubr.msk.bf16.gmra.mrb[4].mxu0 %vm362_vm0, %v1478_v11  ;;  %1317 = vmatprep.subr.bf16.mxu1 %v1489_v18 }
  0x4e   : > { %1297 = vmatprep.mubr.msk.bf16.mxu0 %vm362_vm0, %v1479_v12  ;;  %1342 = vmatpush3.bf16.msra.mxu0 %v1493_v22  ;;  %v1500_v22 = vld [vmem:[%s1946_s4 + $0x8] sm:$0xff]  }
  0x4f   : > { %1343 = vmatprep.subr.bf16.mxu0 %v1494_v23 }
  0x50   : > { %1318 = vmatpush3.bf16.msra.mxu1 %v1489_v18 }
  0x51   : > { %1319 = vmatprep.subr.bf16.mxu1 %v1490_v19 }
  0x52   : > { %1344 = vmatpush3.bf16.msra.mxu0 %v1494_v23  ;;  %v1501_v23 = vld [vmem:[%s1946_s4 + $0x10] sm:$0xff]  }
  0x53   : > { %1345 = vmatprep.subr.bf16.mxu0 %v1495_v24 }
  0x54   : > { %1320 = vmatpush3.bf16.msra.mxu1 %v1490_v19  ;;  %v1497_v19 = vld [vmem:[%s1945_s3 + $0x30] sm:$0xff]  }
  0x55   : > { %1298 = vmatmul.mubr.msk.bf16.gmra.mrb[8].mxu0 %vm362_vm0, %v1480_v15  ;;  %1401 = vmatprep.subr.bf16.mxu1 %v1499_v21 }
  0x56   : > { %1301 = vmatprep.mubr.msk.bf16.mxu0 %vm362_vm0, %v1481_v16  ;;  %1346 = vmatpush3.bf16.msra.mxu0 %v1495_v24  ;;  %v1812_v24 = vld [vmem:[%s1946_s4 + $0x18] sm:$0xff]  }
  0x57   : > { %1347 = vmatprep.subr.bf16.mxu0 %v1496_v25 }
  0x5a   : > { %1348 = vmatpush3.bf16.msra.mxu0 %v1496_v25  ;;  %v1818_v25 = vld [vmem:[%s1946_s4 + $0x20] sm:$0xff]  }
  0x5b   : > { %1349 = vmatprep.subr.bf16.mxu0 %v1497_v19 }
  0x5d   : > { %1302 = vmatmul.mubr.msk.bf16.gmra.mrb[12].mxu0 %vm362_vm0, %v1482_v17 }
  0x5e   : > { %1350 = vmatpush3.bf16.msra.mxu0 %v1497_v19 }
  0x5f   : > { %1351 = vmatprep.subr.bf16.mxu0 %v1498_v20 }
  0x62   : > { %1352 = vmatpush3.bf16.msra.mxu0 %v1498_v20  ;;  %v1505_v20 = vld [vmem:[%s1946_s4 + $0x30] sm:$0xff]  }
  0x63   : > { %1369 = vmatprep.subr.bf16.mxu0 %v1499_v21 }
 0x118   : > { %v1291_v27 = vpop.f32.mrb[0].mxu0 }
 0x119   : > { %v430_v28 = vadd.f32 %v1291_v27, %v1167_v26  ;;  %v421_v29 = vpop.f32.mrb[1].mxu0  ;;  %v1833_v27 = vld [vmem:[%s1947_s5 + $0x1] ss:$0 sm:$0xff] }
 0x11a   : > { %v422_v30 = vadd.f32 %v1167_v26, %v421_v29  ;;  %v1292_v31 = vpop.f32.mrb[2].mxu0 }
 0x11b   : > { %v433_v32 = vadd.f32 %v1292_v31, %v1167_v26  ;;  %v424_v33 = vpop.f32.mrb[3].mxu0  ;;  %v486_v35 = vmax.f32 %v430_v28, 0.0 }
 0x11c   : > { %v425_v34 = vadd.f32 %v1167_v26, %v424_v33  ;;  %v484_v37 = vmax.f32 %v422_v30, 0.0 }
 0x11d   : > { %v487_v36 = vmax.f32 %v433_v32, 0.0 }
 0x11e   : > { %v485_v38 = vmax.f32 %v425_v34, 0.0 }
 0x11f   : > { %v501_v39 = vpack.c.bf16 %v487_v36, %v486_v35 }
 0x120   : > { %v1295_v40 = vpop.f32.mrb[4].mxu0  ;;  %v500_v41 = vpack.c.bf16 %v485_v38, %v484_v37 }
 0x121   : > { %v446_v42 = vadd.f32 %v1295_v40, %v1167_v26  ;;  %v437_v43 = vpop.f32.mrb[5].mxu0 }
 0x122   : > { %v438_v44 = vadd.f32 %v1167_v26, %v437_v43  ;;  %v1296_v45 = vpop.f32.mrb[6].mxu0  ;;  %1321 = vmatprep.mubr.bf16.mxu1 %v500_v41 }
 0x123   : > { %v449_v46 = vadd.f32 %v1296_v45, %v1167_v26  ;;  %v440_v47 = vpop.f32.mrb[7].mxu0  ;;  %1322 = vmatmul.mubr.bf16.vlgmr.msra.gmra.mrb[0].mxu1 %v501_v39  ;;  %v490_v49 = vmax.f32 %v446_v42, 0.0 }
 0x124   : > { %v441_v48 = vadd.f32 %v1167_v26, %v440_v47  ;;  %v488_v51 = vmax.f32 %v438_v44, 0.0  ;;  %1409 = vmatpush3.bf16.msra.mxu1 %v1499_v21 }
 0x125   : > { %v491_v50 = vmax.f32 %v449_v46, 0.0  ;;  %1402 = vmatprep.subr.bf16.mxu1 %v1500_v22 }
 0x126   : > { %v489_v52 = vmax.f32 %v441_v48, 0.0 }
 0x127   : > { %v503_v53 = vpack.c.bf16 %v491_v50, %v490_v49 }
 0x128   : > { %v502_v54 = vpack.c.bf16 %v489_v52, %v488_v51  ;;  %v1299_v55 = vpop.f32.mrb[8].mxu0  ;;  %1410 = vmatpush3.bf16.msra.mxu1 %v1500_v22 }
 0x129   : > { %v462_v56 = vadd.f32 %v1299_v55, %v1167_v26  ;;  %v453_v57 = vpop.f32.mrb[9].mxu0  ;;  %1403 = vmatprep.subr.bf16.mxu1 %v1501_v23 }
 0x12a   : > { %v454_v58 = vadd.f32 %v1167_v26, %v453_v57  ;;  %v1300_v59 = vpop.f32.mrb[10].mxu0  ;;  %1325 = vmatprep.mubr.bf16.mxu1 %v502_v54 }
 0x12b   : > { %v465_v60 = vadd.f32 %v1300_v59, %v1167_v26  ;;  %v456_v61 = vpop.f32.mrb[11].mxu0  ;;  %1326 = vmatmul.mubr.bf16.gmra.mrb[4].mxu1 %v503_v53  ;;  %v494_v63 = vmax.f32 %v462_v56, 0.0 }
 0x12c   : > { %v457_v62 = vadd.f32 %v1167_v26, %v456_v61  ;;  %v492_v1 = vmax.f32 %v454_v58, 0.0  ;;  %1411 = vmatpush3.bf16.msra.mxu1 %v1501_v23 }
 0x12d   : > { %v495_v0 = vmax.f32 %v465_v60, 0.0  ;;  %1404 = vmatprep.subr.bf16.mxu1 %v1812_v24 }
 0x12e   : > { %v493_v2 = vmax.f32 %v457_v62, 0.0 }
 0x12f   : > { %v505_v3 = vpack.c.bf16 %v495_v0, %v494_v63 }
 0x130   : > { %v504_v4 = vpack.c.bf16 %v493_v2, %v492_v1  ;;  %v1303_v5 = vpop.f32.mrb[12].mxu0  ;;  %1412 = vmatpush3.bf16.msra.mxu1 %v1812_v24 }
 0x131   : > { %v478_v6 = vadd.f32 %v1303_v5, %v1167_v26  ;;  %v469_v7 = vpop.f32.mrb[13].mxu0  ;;  %1405 = vmatprep.subr.bf16.mxu1 %v1818_v25 }
 0x132   : > { %v470_v8 = vadd.f32 %v1167_v26, %v469_v7  ;;  %v1304_v9 = vpop.f32.mrb[14].mxu0  ;;  %1329 = vmatprep.mubr.bf16.mxu1 %v504_v4 }
 0x133   : > { %v481_v10 = vadd.f32 %v1304_v9, %v1167_v26  ;;  %v472_v11 = vpop.f32.mrb[15].mxu0  ;;  %1330 = vmatmul.mubr.bf16.gmra.mrb[8].mxu1 %v505_v3  ;;  %v498_v13 = vmax.f32 %v478_v6, 0.0 }
 0x134   : > { %v473_v12 = vadd.f32 %v1167_v26, %v472_v11  ;;  %v496_v15 = vmax.f32 %v470_v8, 0.0  ;;  %v1825_v26 = vld [vmem:[%s1946_s4 + $0x28] sm:$0xff]   ;;  %1413 = vmatpush3.bf16.msra.mxu1 %v1818_v25 }
 0x135   : > { %v499_v14 = vmax.f32 %v481_v10, 0.0  ;;  %1406 = vmatprep.subr.bf16.mxu1 %v1825_v26 }
 0x136   : > { %v497_v16 = vmax.f32 %v473_v12, 0.0 }
 0x137   : > { %v507_v17 = vpack.c.bf16 %v499_v14, %v498_v13 }
 0x138   : > { %v506_v18 = vpack.c.bf16 %v497_v16, %v496_v15  ;;  %1414 = vmatpush3.bf16.msra.mxu1 %v1825_v26 }
 0x139   : > { %1407 = vmatprep.subr.bf16.mxu1 %v1505_v20 }
 0x13a   : > { %1333 = vmatprep.mubr.bf16.mxu1 %v506_v18 }
 0x13b   : > { %1334 = vmatmul.mubr.bf16.gmra.mrb[12].mxu1 %v507_v17 }
 0x13c   : > { %1415 = vmatpush3.bf16.msra.mxu1 %v1505_v20 }
 0x1f6   : > { %v1323_v28 = vpop.f32.mrb[0].mxu1 }
 0x1f7   : > { %v620_v29 = vadd.f32 %v1323_v28, %v1833_v27  ;;  %v611_v30 = vpop.f32.mrb[1].mxu1 }
 0x1f8   : > { %v612_v31 = vadd.f32 %v1833_v27, %v611_v30  ;;  %v1324_v32 = vpop.f32.mrb[2].mxu1 }
 0x1f9   : > { %v623_v33 = vadd.f32 %v1324_v32, %v1833_v27  ;;  %v614_v34 = vpop.f32.mrb[3].mxu1  ;;  %v676_v36 = vmax.f32 %v620_v29, 0.0 }
 0x1fa   : > { %v615_v35 = vadd.f32 %v1833_v27, %v614_v34  ;;  %v674_v38 = vmax.f32 %v612_v31, 0.0 }
 0x1fb   : > { %v677_v37 = vmax.f32 %v623_v33, 0.0 }
 0x1fc   : > { %v675_v39 = vmax.f32 %v615_v35, 0.0 }
 0x1fd   : > { %v691_v40 = vpack.c.bf16 %v677_v37, %v676_v36 }
 0x1fe   : > { %v690_v41 = vpack.c.bf16 %v675_v39, %v674_v38  ;;  %v1327_v42 = vpop.f32.mrb[4].mxu1 }
 0x1ff   : > { %v636_v43 = vadd.f32 %v1327_v42, %v1833_v27  ;;  %v627_v44 = vpop.f32.mrb[5].mxu1 }
 0x200   : > { %v628_v45 = vadd.f32 %v1833_v27, %v627_v44  ;;  %v1328_v46 = vpop.f32.mrb[6].mxu1  ;;  %1353 = vmatprep.mubr.bf16.mxu0 %v690_v41 }
 0x201   : > { %v639_v47 = vadd.f32 %v1328_v46, %v1833_v27  ;;  %v630_v48 = vpop.f32.mrb[7].mxu1  ;;  %1354 = vmatmul.mubr.bf16.vlgmr.msra.gmra.mrb[16].mxu0 %v691_v40  ;;  %v680_v50 = vmax.f32 %v636_v43, 0.0 }
 0x202   : > { %v631_v49 = vadd.f32 %v1833_v27, %v630_v48  ;;  %1370 = vmatpush3.bf16.msra.mxu0 %v1499_v21  ;;  %v678_v52 = vmax.f32 %v628_v45, 0.0  ;;  %v1506_v21 = vld [vmem:[%s1946_s4 + $0x38] sm:$0xff]  }
 0x203   : > { %v681_v51 = vmax.f32 %v639_v47, 0.0  ;;  %1371 = vmatprep.subr.bf16.mxu0 %v1500_v22  ;;  %1408 = vmatprep.subr.bf16.mxu1 %v1506_v21 }
 0x204   : > { %v679_v53 = vmax.f32 %v631_v49, 0.0  ;;  %1416 = vmatpush3.bf16.msra.mxu1 %v1506_v21 }
 0x205   : > { %v693_v54 = vpack.c.bf16 %v681_v51, %v680_v50 }
 0x206   : > { %v692_v55 = vpack.c.bf16 %v679_v53, %v678_v52  ;;  %v1331_v56 = vpop.f32.mrb[8].mxu1  ;;  %1372 = vmatpush3.bf16.msra.mxu0 %v1500_v22  ;;  %v1197_v22 = vld [vmem:[%s1947_s5 + $0x2] ss:$0 sm:$0xff] }
 0x207   : > { %v652_v57 = vadd.f32 %v1331_v56, %v1833_v27  ;;  %v643_v58 = vpop.f32.mrb[9].mxu1  ;;  %1373 = vmatprep.subr.bf16.mxu0 %v1501_v23 }
 0x208   : > { %v644_v59 = vadd.f32 %v1833_v27, %v643_v58  ;;  %v1332_v60 = vpop.f32.mrb[10].mxu1  ;;  %1357 = vmatprep.mubr.bf16.mxu0 %v692_v55 }
 0x209   : > { %v655_v61 = vadd.f32 %v1332_v60, %v1833_v27  ;;  %v646_v62 = vpop.f32.mrb[11].mxu1  ;;  %1358 = vmatmul.mubr.bf16.gmra.mrb[20].mxu0 %v693_v54  ;;  %v684_v0 = vmax.f32 %v652_v57, 0.0 }
 0x20a   : > { %v647_v63 = vadd.f32 %v1833_v27, %v646_v62  ;;  %1374 = vmatpush3.bf16.msra.mxu0 %v1501_v23  ;;  %v682_v2 = vmax.f32 %v644_v59, 0.0 }
 0x20b   : > { %v685_v1 = vmax.f32 %v655_v61, 0.0  ;;  %1375 = vmatprep.subr.bf16.mxu0 %v1812_v24 }
 0x20c   : > { %v683_v3 = vmax.f32 %v647_v63, 0.0 }
 0x20d   : > { %v695_v4 = vpack.c.bf16 %v685_v1, %v684_v0 }
 0x20e   : > { %v694_v5 = vpack.c.bf16 %v683_v3, %v682_v2  ;;  %v1335_v6 = vpop.f32.mrb[12].mxu1  ;;  %1376 = vmatpush3.bf16.msra.mxu0 %v1812_v24 }
 0x20f   : > { %v668_v7 = vadd.f32 %v1335_v6, %v1833_v27  ;;  %v659_v8 = vpop.f32.mrb[13].mxu1  ;;  %1377 = vmatprep.subr.bf16.mxu0 %v1818_v25 }
 0x210   : > { %v660_v9 = vadd.f32 %v1833_v27, %v659_v8  ;;  %v1336_v10 = vpop.f32.mrb[14].mxu1  ;;  %1361 = vmatprep.mubr.bf16.mxu0 %v694_v5 }
 0x211   : > { %v671_v11 = vadd.f32 %v1336_v10, %v1833_v27  ;;  %v662_v12 = vpop.f32.mrb[15].mxu1  ;;  %1362 = vmatmul.mubr.bf16.gmra.mrb[24].mxu0 %v695_v4  ;;  %v688_v14 = vmax.f32 %v668_v7, 0.0 }
 0x212   : > { %v663_v13 = vadd.f32 %v1833_v27, %v662_v12  ;;  %1378 = vmatpush3.bf16.msra.mxu0 %v1818_v25  ;;  %v686_v16 = vmax.f32 %v660_v9, 0.0 }
 0x213   : > { %v689_v15 = vmax.f32 %v671_v11, 0.0  ;;  %1379 = vmatprep.subr.bf16.mxu0 %v1825_v26 }
 0x214   : > { %v687_v17 = vmax.f32 %v663_v13, 0.0 }
 0x215   : > { %v697_v18 = vpack.c.bf16 %v689_v15, %v688_v14  ;;  %v1206_v15 = vld [vmem:[%s1947_s5 + $0x3] ss:$0 sm:$0xff] }
 0x216   : > { %v696_v19 = vpack.c.bf16 %v687_v17, %v686_v16  ;;  %1380 = vmatpush3.bf16.msra.mxu0 %v1825_v26 }
 0x217   : > { %1381 = vmatprep.subr.bf16.mxu0 %v1505_v20 }
 0x218   : > { %1365 = vmatprep.mubr.bf16.mxu0 %v696_v19 }
 0x219   : > { %1366 = vmatmul.mubr.bf16.gmra.mrb[28].mxu0 %v697_v18 }
 0x21a   : > { %1382 = vmatpush3.bf16.msra.mxu0 %v1505_v20 }
 0x21b   : > { %1383 = vmatprep.subr.bf16.mxu0 %v1506_v21 }
 0x21e   : > { %1384 = vmatpush3.bf16.msra.mxu0 %v1506_v21 }
 0x2d4   : > { %v1355_v23 = vpop.f32.mrb[16].mxu0 }
 0x2d5   : > { %v810_v24 = vadd.f32 %v1355_v23, %v1197_v22  ;;  %v801_v25 = vpop.f32.mrb[17].mxu0 }
 0x2d6   : > { %v802_v26 = vadd.f32 %v1197_v22, %v801_v25  ;;  %v1356_v27 = vpop.f32.mrb[18].mxu0 }
 0x2d7   : > { %v813_v28 = vadd.f32 %v1356_v27, %v1197_v22  ;;  %v804_v29 = vpop.f32.mrb[19].mxu0  ;;  %v866_v31 = vmax.f32 %v810_v24, 0.0 }
 0x2d8   : > { %v805_v30 = vadd.f32 %v1197_v22, %v804_v29  ;;  %v864_v33 = vmax.f32 %v802_v26, 0.0 }
 0x2d9   : > { %v867_v32 = vmax.f32 %v813_v28, 0.0 }
 0x2da   : > { %v865_v34 = vmax.f32 %v805_v30, 0.0 }
 0x2db   : > { %v881_v35 = vpack.c.bf16 %v867_v32, %v866_v31 }
 0x2dc   : > { %v880_v36 = vpack.c.bf16 %v865_v34, %v864_v33  ;;  %v1359_v37 = vpop.f32.mrb[20].mxu0 }
 0x2dd   : > { %v826_v38 = vadd.f32 %v1359_v37, %v1197_v22  ;;  %v817_v39 = vpop.f32.mrb[21].mxu0 }
 0x2de   : > { %v818_v40 = vadd.f32 %v1197_v22, %v817_v39  ;;  %v1360_v41 = vpop.f32.mrb[22].mxu0  ;;  %1385 = vmatprep.mubr.bf16.mxu0 %v880_v36 }
 0x2df   : > { %v829_v42 = vadd.f32 %v1360_v41, %v1197_v22  ;;  %v820_v43 = vpop.f32.mrb[23].mxu0  ;;  %1386 = vmatmul.mubr.bf16.vlgmr.msra.gmra.mrb[32].mxu0 %v881_v35  ;;  %v870_v45 = vmax.f32 %v826_v38, 0.0 }
 0x2e0   : > { %v821_v44 = vadd.f32 %v1197_v22, %v820_v43  ;;  %v868_v47 = vmax.f32 %v818_v40, 0.0 }
 0x2e1   : > { %v871_v46 = vmax.f32 %v829_v42, 0.0 }
 0x2e2   : > { %v869_v48 = vmax.f32 %v821_v44, 0.0 }
 0x2e3   : > { %v883_v49 = vpack.c.bf16 %v871_v46, %v870_v45 }
 0x2e4   : > { %v882_v50 = vpack.c.bf16 %v869_v48, %v868_v47  ;;  %v1363_v51 = vpop.f32.mrb[24].mxu0 }
 0x2e5   : > { %v842_v52 = vadd.f32 %v1363_v51, %v1197_v22  ;;  %v833_v53 = vpop.f32.mrb[25].mxu0 }
 0x2e6   : > { %v834_v54 = vadd.f32 %v1197_v22, %v833_v53  ;;  %v1364_v55 = vpop.f32.mrb[26].mxu0  ;;  %1389 = vmatprep.mubr.bf16.mxu1 %v882_v50 }
 0x2e7   : > { %v845_v56 = vadd.f32 %v1364_v55, %v1197_v22  ;;  %v836_v57 = vpop.f32.mrb[27].mxu0  ;;  %1390 = vmatmul.mubr.bf16.vlgmr.msra.gmra.mrb[16].mxu1 %v883_v49  ;;  %v874_v59 = vmax.f32 %v842_v52, 0.0 }
 0x2e8   : > { %v837_v58 = vadd.f32 %v1197_v22, %v836_v57  ;;  %v872_v61 = vmax.f32 %v834_v54, 0.0 }
 0x2e9   : > { %v875_v60 = vmax.f32 %v845_v56, 0.0 }
 0x2ea   : > { %v873_v62 = vmax.f32 %v837_v58, 0.0 }
 0x2eb   : > { %v885_v63 = vpack.c.bf16 %v875_v60, %v874_v59 }
 0x2ec   : > { %v884_v0 = vpack.c.bf16 %v873_v62, %v872_v61  ;;  %v1367_v1 = vpop.f32.mrb[28].mxu0 }
 0x2ed   : > { %v858_v2 = vadd.f32 %v1367_v1, %v1197_v22  ;;  %v849_v3 = vpop.f32.mrb[29].mxu0 }
 0x2ee   : > { %v850_v4 = vadd.f32 %v1197_v22, %v849_v3  ;;  %v1368_v5 = vpop.f32.mrb[30].mxu0  ;;  %1393 = vmatprep.mubr.bf16.mxu1 %v884_v0 }
 0x2ef   : > { %v861_v6 = vadd.f32 %v1368_v5, %v1197_v22  ;;  %v852_v7 = vpop.f32.mrb[31].mxu0  ;;  %1394 = vmatmul.mubr.bf16.gmra.mrb[20].mxu1 %v885_v63  ;;  %v878_v9 = vmax.f32 %v858_v2, 0.0 }
 0x2f0   : > { %v853_v8 = vadd.f32 %v1197_v22, %v852_v7  ;;  %v876_v11 = vmax.f32 %v850_v4, 0.0 }
 0x2f1   : > { %v879_v10 = vmax.f32 %v861_v6, 0.0 }
 0x2f2   : > { %v877_v12 = vmax.f32 %v853_v8, 0.0 }
 0x2f3   : > { %v887_v13 = vpack.c.bf16 %v879_v10, %v878_v9 }
 0x2f4   : > { %v886_v14 = vpack.c.bf16 %v877_v12, %v876_v11 }
 0x2f6   : > { %1397 = vmatprep.mubr.bf16.mxu1 %v886_v14 }
 0x2f7   : > { %1398 = vmatmul.mubr.bf16.gmra.mrb[24].mxu1 %v887_v13 }
 0x3b2   : > { %v1387_v16 = vpop.f32.mrb[32].mxu0 }
 0x3b3   : > { %v1000_v17 = vadd.f32 %v1387_v16, %v1206_v15  ;;  %v991_v18 = vpop.f32.mrb[33].mxu0 }
 0x3b4   : > { %v992_v19 = vadd.f32 %v1206_v15, %v991_v18  ;;  %v1388_v20 = vpop.f32.mrb[34].mxu0 }
 0x3b5   : > { %1056 = vst [vmem:[%s1872_s15 + $0x10] sm:$0xff] %v1000_v17  ;;  %v1003_v21 = vadd.f32 %v1388_v20, %v1206_v15  ;;  %v994_v22 = vpop.f32.mrb[35].mxu0 }
 0x3b6   : > { %1054 = vst [vmem:[%s1872_s15] sm:$0xff] %v992_v19  ;;  %v995_v23 = vadd.f32 %v1206_v15, %v994_v22 }
 0x3b7   : > { %1057 = vst [vmem:[%s1872_s15 + $0x18] sm:$0xff] %v1003_v21 }
 0x3b8   : > { %1055 = vst [vmem:[%s1872_s15 + $0x8] sm:$0xff] %v995_v23 }
 0x3ba   : > { %v1391_v24 = vpop.f32.mrb[16].mxu1 }
 0x3bb   : > { %v1016_v25 = vadd.f32 %v1391_v24, %v1206_v15  ;;  %v1007_v26 = vpop.f32.mrb[17].mxu1 }
 0x3bc   : > { %v1008_v27 = vadd.f32 %v1206_v15, %v1007_v26  ;;  %v1392_v28 = vpop.f32.mrb[18].mxu1 }
 0x3bd   : > { %1060 = vst [vmem:[%s1872_s15 + $0x30] sm:$0xff] %v1016_v25  ;;  %v1019_v29 = vadd.f32 %v1392_v28, %v1206_v15  ;;  %v1010_v30 = vpop.f32.mrb[19].mxu1 }
 0x3be   : > { %1058 = vst [vmem:[%s1872_s15 + $0x20] sm:$0xff] %v1008_v27  ;;  %v1011_v31 = vadd.f32 %v1206_v15, %v1010_v30 }
 0x3bf   : > { %1061 = vst [vmem:[%s1872_s15 + $0x38] sm:$0xff] %v1019_v29 }
 0x3c0   : > { %1059 = vst [vmem:[%s1872_s15 + $0x28] sm:$0xff] %v1011_v31 }
 0x3c2   : > { %v1395_v32 = vpop.f32.mrb[20].mxu1 }
 0x3c3   : > { %v1032_v33 = vadd.f32 %v1395_v32, %v1206_v15  ;;  %v1023_v34 = vpop.f32.mrb[21].mxu1 }
 0x3c4   : > { %v1024_v35 = vadd.f32 %v1206_v15, %v1023_v34  ;;  %v1396_v36 = vpop.f32.mrb[22].mxu1 }
 0x3c5   : > { %1064 = vst [vmem:[%s1872_s15 + $0x50] sm:$0xff] %v1032_v33  ;;  %v1035_v37 = vadd.f32 %v1396_v36, %v1206_v15  ;;  %v1026_v38 = vpop.f32.mrb[23].mxu1 }
 0x3c6   : > { %1062 = vst [vmem:[%s1872_s15 + $0x40] sm:$0xff] %v1024_v35  ;;  %v1027_v39 = vadd.f32 %v1206_v15, %v1026_v38 }
 0x3c7   : > { %1065 = vst [vmem:[%s1872_s15 + $0x58] sm:$0xff] %v1035_v37 }
 0x3c8   : > { %1063 = vst [vmem:[%s1872_s15 + $0x48] sm:$0xff] %v1027_v39 }
 0x3ca   : > { %v1399_v40 = vpop.f32.mrb[24].mxu1 }
 0x3cb   : > { %v1048_v41 = vadd.f32 %v1399_v40, %v1206_v15  ;;  %v1039_v42 = vpop.f32.mrb[25].mxu1 }
 0x3cc   : > { %v1040_v43 = vadd.f32 %v1206_v15, %v1039_v42  ;;  %v1400_v44 = vpop.f32.mrb[26].mxu1 }
 0x3cd   : > { %1068 = vst [vmem:[%s1872_s15 + $0x70] sm:$0xff] %v1048_v41  ;;  %v1051_v45 = vadd.f32 %v1400_v44, %v1206_v15  ;;  %v1042_v46 = vpop.f32.mrb[27].mxu1 }
 0x3ce   : > { %1066 = vst [vmem:[%s1872_s15 + $0x60] sm:$0xff] %v1040_v43  ;;  %v1043_v47 = vadd.f32 %v1206_v15, %v1042_v46 }
 0x3cf   : > { %1069 = vst [vmem:[%s1872_s15 + $0x78] sm:$0xff] %v1051_v45 }
 0x3d0   : > { %1067 = vst [vmem:[%s1872_s15 + $0x68] sm:$0xff] %v1043_v47 }
 0x3d1   : > { %1548 = shalt.err (!%p1545_p7)
}
 0x3d2   : > { %s1549_s29 = scalar_lea.hbm %s1892_s19, 2048  ;;  %s1553_s14 = scalar_lea.hbm %s1948_s6, 4096 }
 0x3d3   : > { %p1550_p8 = scmp.ne.s32.totalorder %s1892_s19, %s1549_s29  ;;  %p1554_p1 = scmp.lt.u32.totalorder %s1892_s19, %s1948_s6 }
 0x3d4   : > { %p1555_p0 = scmp.lt.u32.totalorder %s1553_s14, %s1549_s29  ;;  %p1557_p6 = scmp.lt.u32.totalorder %s1549_s29, %s1892_s19 }
 0x3d5   : > { %p1551_p11 = pnand %p1550_p8, %p1959_p9 }
 0x3d6   : > { %p1556_p5 = por %p1555_p0, %p1554_p1 }
 0x3d7   : > { %p1552_p13 = pneg %p1551_p11 }
 0x3d8   : > { %p1558_p10 = por %p1557_p6, %p1556_p5 }
 0x3da   : > { %p1559_p12 = pnand %p1558_p10, %p1552_p13 }
 0x3dc   : > { %1562 = shalt.err (!%p1559_p12)
}
 0x3dd   : > { %s1607_s9 = smov 128   ;;  %s1608_s17 = smov 8  }
 0x3de   : > { %1421 = dma.vmem_to_hbm [thread:$0]  (%p1959_p9), %s1894_s16, 2048, %s1892_s19, %s1901_s25, %s1607_s9, %s1607_s9, %s1608_s17  }
 0x3df PF: > { %p1433_p2 = scmp.ge.s32.totalorder %s1601_s24, 2  ;;  %s1099_s18 = sand.u32 1, %s1589_s21  }
 0x3e0   : > { %p1960_p3 = scmp.ne.s32.totalorder %s1953_s8, 0  ;;  %s1100_s11 = scalar_lea.sflag [#allocation4], %s1099_s18 }
 0x3e2   : > { %p1428_p4 = pnand %p1433_p2, %p1960_p3 }
 0x3e4   : > { %1584 = dma.done.wait (!%p1428_p4), %s1100_s11, 2048  }
 0x3e5   : > { %1586 = vsyncadd (!%p1428_p4), %s1100_s11, 4294965248  ;;  %p17_p7 = scmp.ge.s32.totalorder %s1669_s27, 4   ;;  %s1961_s21 = smov %s1593_s22 }
 0x3e6   : > { %s1962_s22 = smov %s1597_s23  ;;  %s1963_s23 = smov %s1680_s30 }
 0x3e7   : > { %s1964_s24 = smov %s1669_s27  ;;  %19 = sbr.rel (!%p17_p7) target bundleno = 4 (0x4), region = 84 }
 0x3ee   :  { %1105 = vsyncpa [#allocation3], 1 }
 0x3ef   :  { %1107 = vsyncpa [#allocation3 + $0x1], 1 }
 0x3f0   :  { %1108 = vsyncpa [#allocation4], 1 }
 0x3f1   :  { %1110 = vsyncpa [#allocation4 + $0x1], 1 }

</bundles_post_ra>
